<compile_context>
chip_gen: v5e
topology: v5e:2x2
jax: 0.10.0
libtpu: 0.0.40
codegen_flags: <defaults>
</compile_context>

<pallas_src>
import jax
import jax.numpy as jnp
from jax.experimental import pallas as pl
from jax.experimental.pallas import tpu as pltpu

IN_FEATURES = 28 * 28          # 784
H1, H2 = 512, 256
N_OUT = 10


def mlp_kernel(x_ref, w1_ref, b1_ref, w2_ref, b2_ref, w3_ref, b3_ref, o_ref):
    """One batch tile of relu(relu(x@W1+b1)@W2+b2)@W3+b3 (bf16 MXU, f32 accum/VPU)."""
    # Cast the f32 x tile to bf16 in VMEM (saves the wrapper pad/cast HBM pass).
    x = x_ref[...].astype(jnp.bfloat16)
    # fc1: bf16 MXU inputs, f32 accumulation; bias add + ReLU in f32 (v5e-safe VPU)
    h1 = jnp.dot(x, w1_ref[...], preferred_element_type=jnp.float32)
    h1 = jnp.maximum(h1 + b1_ref[...], 0.0)
    # fc2
    h2 = jnp.dot(h1.astype(jnp.bfloat16), w2_ref[...],
                 preferred_element_type=jnp.float32)
    h2 = jnp.maximum(h2 + b2_ref[...], 0.0)
    # fc3: true 10-wide output (masked lane store is cheap and hides under MXU/DMA)
    o_ref[...] = (jnp.dot(h2.astype(jnp.bfloat16), w3_ref[...],
                          preferred_element_type=jnp.float32) + b3_ref[...])


def init_params(key):
    """PyTorch-Linear-style init: uniform(-1/sqrt(fan_in), 1/sqrt(fan_in)).

    Weights stored as (in, out) so the kernel computes x @ W (== x @ weight.T).
    """
    dims = [(IN_FEATURES, H1), (H1, H2), (H2, N_OUT)]
    params = []
    for fan_in, fan_out in dims:
        key, kw, kb = jax.random.split(key, 3)
        bound = 1.0 / jnp.sqrt(jnp.float32(fan_in))
        w = jax.random.uniform(kw, (fan_in, fan_out), jnp.float32, -bound, bound)
        b = jax.random.uniform(kb, (1, fan_out), jnp.float32, -bound, bound)
        params.append((w, b))
    return params


def pack_params(params):
    """One-time packing (done OUTSIDE the jitted forward): bf16 MXU weights, f32 biases."""
    (w1, b1), (w2, b2), (w3, b3) = params
    return (w1.astype(jnp.bfloat16), b1,
            w2.astype(jnp.bfloat16), b2,
            w3.astype(jnp.bfloat16), b3)


def _choose_tile(b):
    """Return (padded_batch, batch_tile).

    * Tiny/medium batches (<=256 rows): single tile, padded to a multiple of 16
      (full bf16 sublane packing); per-call overhead dominates anyway.
    * Large batches: tiles up to 512 rows to amortize the ~0.35 us/grid-step
      cost, but always >= 2 tiles so the "parallel" batch axis can be split
      across both TensorCores on v7x.
    """
    bpad = max(16, -(-b // 16) * 16)
    if bpad <= 256:
        return bpad, bpad
    half = max(128, (bpad // 2) // 128 * 128)   # >= 128-row floor, 128-aligned
    tb = min(512, half)
    bpad = -(-bpad // tb) * tb
    return bpad, tb


@jax.jit
def net_forward(x, w1, b1, w2, b2, w3, b3):
    B = x.shape[0]
    x2d = x.reshape(B, IN_FEATURES)              # x.view(-1, 784)
    Bpad, TB = _choose_tile(B)
    if Bpad != B:
        # Explicit zero-pad of the (small) batch remainder keeps OOB rows defined.
        x2d = jnp.pad(x2d, ((0, Bpad - B), (0, 0)))

    const = lambda i: (0, 0)                     # weights/biases resident across tiles
    out = pl.pallas_call(
        mlp_kernel,
        out_shape=jax.ShapeDtypeStruct((Bpad, N_OUT), jnp.float32),
        grid=(Bpad // TB,),
        in_specs=[
            pl.BlockSpec((TB, IN_FEATURES), lambda i: (i, 0)),   # f32 x tile (pipelined)
            pl.BlockSpec((IN_FEATURES, H1), const),              # bf16 W1
            pl.BlockSpec((1, H1), const),                        # f32 b1
            pl.BlockSpec((H1, H2), const),                       # bf16 W2
            pl.BlockSpec((1, H2), const),                        # f32 b2
            pl.BlockSpec((H2, N_OUT), const),                    # bf16 W3
            pl.BlockSpec((1, N_OUT), const),                     # f32 b3
        ],
        out_specs=pl.BlockSpec((TB, N_OUT), lambda i: (i, 0)),
        compiler_params=pltpu.CompilerParams(
            dimension_semantics=("parallel",),   # batch tiles -> both TCs on v7x
            vmem_limit_bytes=32 * 1024 * 1024,   # plenty even at TB=512 (<< 32 MiB used)
        ),
    )(x2d, w1, b1, w2, b2, w3, b3)
    return out[:B]


if __name__ == "__main__":
    key = jax.random.PRNGKey(0)
    kx, kp = jax.random.split(key)

    # same shape as the PyTorch example: x = torch.randn(4, 28, 28)
    x = jax.random.normal(kx, (4, 28, 28), jnp.float32)
    params = init_params(kp)
    packed = pack_params(params)     # one-time bf16 weight packing (not per call)

    y = jax.block_until_ready(net_forward(x, *packed))
    assert y.shape == (4, N_OUT) and y.dtype == jnp.float32

    # Reference 1: same mixed precision as the kernel (bf16 matmul inputs, f32 accum)
    def ref_mixed(x2d):
        (w1, b1), (w2, b2), (w3, b3) = params
        h = jnp.maximum(jnp.dot(x2d.astype(jnp.bfloat16), w1.astype(jnp.bfloat16),
                                preferred_element_type=jnp.float32) + b1, 0.0)
        h = jnp.maximum(jnp.dot(h.astype(jnp.bfloat16), w2.astype(jnp.bfloat16),
                                preferred_element_type=jnp.float32) + b2, 0.0)
        return jnp.dot(h.astype(jnp.bfloat16), w3.astype(jnp.bfloat16),
                       preferred_element_type=jnp.float32) + b3

    x2d = x.reshape(4, IN_FEATURES)
    assert jnp.allclose(y, ref_mixed(x2d), atol=1e-2, rtol=1e-2)

    # Reference 2: full-f32 forward (original PyTorch semantics), loose tolerance.
    # NOTE: bf16 MXU inputs intentionally trade exact f32 parity for speed.
    (w1, b1), (w2, b2), (w3, b3) = params
    r = jnp.maximum(x2d @ w1 + b1, 0.0)
    r = jnp.maximum(r @ w2 + b2, 0.0)
    assert jnp.allclose(y, r @ w3 + b3, atol=5e-2, rtol=5e-2)

    # Exercise the multi-tile + batch-padding path (grid > 1, remainder rows).
    xb = jax.random.normal(jax.random.PRNGKey(1), (300, 28, 28), jnp.float32)
    yb = jax.block_until_ready(net_forward(xb, *packed))
    assert yb.shape == (300, N_OUT)
    assert jnp.allclose(yb, ref_mixed(xb.reshape(300, IN_FEATURES)),
                        atol=1e-2, rtol=1e-2)

    print("KERNEL_OK")
</pallas_src>

<mosaic_0001>
module attributes {stable_mosaic.version = 11 : i64} {
  func.func @mlp_kernel(%arg0: i32, %arg1: memref<16x784xf32, #tpu.memory_space<vmem>>, %arg2: memref<784x512xbf16, #tpu.memory_space<vmem>>, %arg3: memref<1x512xf32, #tpu.memory_space<vmem>>, %arg4: memref<512x256xbf16, #tpu.memory_space<vmem>>, %arg5: memref<1x256xf32, #tpu.memory_space<vmem>>, %arg6: memref<256x10xbf16, #tpu.memory_space<vmem>>, %arg7: memref<1x10xf32, #tpu.memory_space<vmem>>, %arg8: memref<16x10xf32, #tpu.memory_space<vmem>>) attributes {dimension_semantics = [#tpu.dimension_semantics<parallel>], iteration_bounds = array<i64: 1>, scalar_prefetch = 0 : i64, scratch_operands = 0 : i64, tpu.core_type = #tpu.core_type<tc>, window_params = [{transform_indices = @transform_0, window_bounds = array<i64: 16, 784>}, {pipeline_mode = #tpu.pipeline_mode<synchronous>, transform_indices = @transform_1, window_bounds = array<i64: 784, 512>}, {pipeline_mode = #tpu.pipeline_mode<synchronous>, transform_indices = @transform_2, window_bounds = array<i64: 1, 512>}, {pipeline_mode = #tpu.pipeline_mode<synchronous>, transform_indices = @transform_3, window_bounds = array<i64: 512, 256>}, {pipeline_mode = #tpu.pipeline_mode<synchronous>, transform_indices = @transform_4, window_bounds = array<i64: 1, 256>}, {pipeline_mode = #tpu.pipeline_mode<synchronous>, transform_indices = @transform_5, window_bounds = array<i64: 256, 10>}, {pipeline_mode = #tpu.pipeline_mode<synchronous>, transform_indices = @transform_6, window_bounds = array<i64: 1, 10>}, {transform_indices = @transform_7, window_bounds = array<i64: 16, 10>}]} {
    %c0 = arith.constant 0 : index
    %c0_0 = arith.constant 0 : index
    %0 = vector.load %arg1[%c0, %c0_0] : memref<16x784xf32, #tpu.memory_space<vmem>>, vector<16x784xf32>
    %1 = arith.truncf %0 : vector<16x784xf32> to vector<16x784xbf16>
    %c0_1 = arith.constant 0 : index
    %c0_2 = arith.constant 0 : index
    %2 = vector.load %arg2[%c0_1, %c0_2] : memref<784x512xbf16, #tpu.memory_space<vmem>>, vector<784x512xbf16>
    %cst = arith.constant dense<0.000000e+00> : vector<16x512xf32>
    %3 = tpu.matmul %1, %2, %cst {dimension_numbers = #tpu.dot_dimension_numbers<[1], [0], [0], [1], [0, 0, 1, 1], [], []>} : vector<16x784xbf16>, vector<784x512xbf16>, vector<16x512xf32> -> vector<16x512xf32>
    %c0_3 = arith.constant 0 : index
    %c0_4 = arith.constant 0 : index
    %4 = vector.load %arg3[%c0_3, %c0_4] : memref<1x512xf32, #tpu.memory_space<vmem>>, vector<1x512xf32>
    %5 = vector.broadcast %4 : vector<1x512xf32> to vector<16x512xf32>
    %6 = arith.addf %3, %5 : vector<16x512xf32>
    %cst_5 = arith.constant 0.000000e+00 : f32
    %7 = vector.broadcast %cst_5 : f32 to vector<16x512xf32>
    %8 = arith.maximumf %6, %7 : vector<16x512xf32>
    %9 = arith.truncf %8 : vector<16x512xf32> to vector<16x512xbf16>
    %c0_6 = arith.constant 0 : index
    %c0_7 = arith.constant 0 : index
    %10 = vector.load %arg4[%c0_6, %c0_7] : memref<512x256xbf16, #tpu.memory_space<vmem>>, vector<512x256xbf16>
    %cst_8 = arith.constant dense<0.000000e+00> : vector<16x256xf32>
    %11 = tpu.matmul %9, %10, %cst_8 {dimension_numbers = #tpu.dot_dimension_numbers<[1], [0], [0], [1], [0, 0, 1, 1], [], []>} : vector<16x512xbf16>, vector<512x256xbf16>, vector<16x256xf32> -> vector<16x256xf32>
    %c0_9 = arith.constant 0 : index
    %c0_10 = arith.constant 0 : index
    %12 = vector.load %arg5[%c0_9, %c0_10] : memref<1x256xf32, #tpu.memory_space<vmem>>, vector<1x256xf32>
    %13 = vector.broadcast %12 : vector<1x256xf32> to vector<16x256xf32>
    %14 = arith.addf %11, %13 : vector<16x256xf32>
    %cst_11 = arith.constant 0.000000e+00 : f32
    %15 = vector.broadcast %cst_11 : f32 to vector<16x256xf32>
    %16 = arith.maximumf %14, %15 : vector<16x256xf32>
    %17 = arith.truncf %16 : vector<16x256xf32> to vector<16x256xbf16>
    %c0_12 = arith.constant 0 : index
    %c0_13 = arith.constant 0 : index
    %18 = vector.load %arg6[%c0_12, %c0_13] : memref<256x10xbf16, #tpu.memory_space<vmem>>, vector<256x10xbf16>
    %cst_14 = arith.constant dense<0.000000e+00> : vector<16x10xf32>
    %19 = tpu.matmul %17, %18, %cst_14 {dimension_numbers = #tpu.dot_dimension_numbers<[1], [0], [0], [1], [0, 0, 1, 1], [], []>} : vector<16x256xbf16>, vector<256x10xbf16>, vector<16x10xf32> -> vector<16x10xf32>
    %c0_15 = arith.constant 0 : index
    %c0_16 = arith.constant 0 : index
    %20 = vector.load %arg7[%c0_15, %c0_16] : memref<1x10xf32, #tpu.memory_space<vmem>>, vector<1x10xf32>
    %21 = vector.broadcast %20 : vector<1x10xf32> to vector<16x10xf32>
    %22 = arith.addf %19, %21 : vector<16x10xf32>
    %c0_17 = arith.constant 0 : index
    %c0_18 = arith.constant 0 : index
    %23 = vector.load %arg8[%c0_17, %c0_18] : memref<16x10xf32, #tpu.memory_space<vmem>>, vector<16x10xf32>
    tpu.vector_store %arg8[%c0_17, %c0_18], %22 {strides = array<i32>} : memref<16x10xf32, #tpu.memory_space<vmem>>, vector<16x10xf32>,
    return
  }
  func.func @transform_0(%arg0: i32) -> (i32, i32) {
    %c0_i32 = arith.constant 0 : i32
    %c0_i32_0 = arith.constant 0 : i32
    return %arg0, %c0_i32 : i32, i32
  }
  func.func @transform_1(%arg0: i32) -> (i32, i32) {
    %c0_i32 = arith.constant 0 : i32
    %c0_i32_0 = arith.constant 0 : i32
    %c0_i32_1 = arith.constant 0 : i32
    return %c0_i32, %c0_i32_0 : i32, i32
  }
  func.func @transform_2(%arg0: i32) -> (i32, i32) {
    %c0_i32 = arith.constant 0 : i32
    %c0_i32_0 = arith.constant 0 : i32
    %c0_i32_1 = arith.constant 0 : i32
    return %c0_i32, %c0_i32_0 : i32, i32
  }
  func.func @transform_3(%arg0: i32) -> (i32, i32) {
    %c0_i32 = arith.constant 0 : i32
    %c0_i32_0 = arith.constant 0 : i32
    %c0_i32_1 = arith.constant 0 : i32
    return %c0_i32, %c0_i32_0 : i32, i32
  }
  func.func @transform_4(%arg0: i32) -> (i32, i32) {
    %c0_i32 = arith.constant 0 : i32
    %c0_i32_0 = arith.constant 0 : i32
    %c0_i32_1 = arith.constant 0 : i32
    return %c0_i32, %c0_i32_0 : i32, i32
  }
  func.func @transform_5(%arg0: i32) -> (i32, i32) {
    %c0_i32 = arith.constant 0 : i32
    %c0_i32_0 = arith.constant 0 : i32
    %c0_i32_1 = arith.constant 0 : i32
    return %c0_i32, %c0_i32_0 : i32, i32
  }
  func.func @transform_6(%arg0: i32) -> (i32, i32) {
    %c0_i32 = arith.constant 0 : i32
    %c0_i32_0 = arith.constant 0 : i32
    %c0_i32_1 = arith.constant 0 : i32
    return %c0_i32, %c0_i32_0 : i32, i32
  }
  func.func @transform_7(%arg0: i32) -> (i32, i32) {
    %c0_i32 = arith.constant 0 : i32
    %c0_i32_0 = arith.constant 0 : i32
    return %arg0, %c0_i32 : i32, i32
  }
}

</mosaic_0001>

<bundles_post_ra>
// kernel: net_forward.1
= control target key start
LH: loop header
LB: loop body
LE: loop exit
PB: predicated region body
PF: predicated region fallthrough
CT: control target
= control target key end

     0   :  { %12 = vsyncpa [#allocation3], 0  ;;  %s3748_s27 = smov [#allocation2]   ;;  %s3749_s29 = smov 256   ;;  %s4342_s0 = inlined_call_operand.vmem [shape: f32[16,784], index: 0, kind: input, shape index: {}]   ;;  %s4343_s1 = inlined_call_operand.hbm [shape: bf16[784,512], index: 1, kind: input, shape index: {}]   ;;  %s4344_s2 = inlined_call_operand.vmem [shape: f32[1,512], index: 2, kind: input, shape index: {}]   ;;  %s4345_s3 = inlined_call_operand.vmem [shape: bf16[512,256], index: 3, kind: input, shape index: {}]   ;;  %s4346_s4 = inlined_call_operand.vmem [shape: f32[1,256], index: 4, kind: input, shape index: {}]   ;;  %s4347_s5 = inlined_call_operand.vmem [shape: bf16[256,10], index: 5, kind: input, shape index: {}]   ;;  %s4348_s6 = inlined_call_operand.vmem [shape: f32[1,10], index: 6, kind: input, shape index: {}]   ;;  %s4349_s7 = inlined_call_operand.vmem [shape: f32[16,10], index: 7, kind: output, shape index: {}]  }
   0x1   :  { %s19_s26 = sshll.u32 %s4343_s1, 4  ;;  %s21_s28 = sshll.u32 %s3748_s27, 4  ;;  %s20_s26 = int_to_ptr.hbm [resolvable:$true] %s19_s26  ;;  %s22_s28 = int_to_ptr.vmem [resolvable:$true] %s21_s28 }
   0x2   :  { %s3750_s30 = smov 16  }
   0x3   :  { %27 = dma.hbm_to_vmem [thread:$0]  %s20_s26, 25088, %s22_s28, [#allocation3], %s3749_s29, %s3749_s29, %s3750_s30  }
   0x4   :  { %3746 = dma.done.wait [#allocation3], 25088  }
   0x5   :  { %3747 = vsyncadd [#allocation3], 4294942208  ;;  %v2448_v0 = vld [vmem:[#allocation2 + $0xe0] sm:$0xf]  ;;  %v3472_v1 = vld [vmem:[#allocation2 + $0xec] sm:$0xf0] }
   0x6   :  { %v2576_v2 = vld [vmem:[#allocation2 + $0x1e0] sm:$0xf]  ;;  %v2449_v3 = vor.u32 %v3472_v1, %v2448_v0  ;;  %v3504_v4 = vld [vmem:[#allocation2 + $0x1ec] sm:$0xf0]  ;;  %vm1250_vm0 = vcmask 130048   ;;  %vm2326_vm1 = vcmask 80896  }
   0x7   :  { %v2704_v5 = vld [vmem:[#allocation2 + $0x2e0] sm:$0xf]  ;;  %v3536_v6 = vld [vmem:[#allocation2 + $0x2ec] sm:$0xf0]  ;;  %v2577_v7 = vor.u32 %v3504_v4, %v2576_v2 }
   0x8   :  { %v2705_v8 = vor.u32 %v3536_v6, %v2704_v5  ;;  %v2832_v9 = vld [vmem:[#allocation2 + $0x3e0] sm:$0xf]  ;;  %v3568_v10 = vld [vmem:[#allocation2 + $0x3ec] sm:$0xf0]  ;;  %1254 = vmatpush.bf16.msra.mxu0 %v2449_v3 }
   0x9   :  { %v2432_v11 = vld [vmem:[#allocation2 + $0xc0] sm:$0xf]  ;;  %v2833_v12 = vor.u32 %v3568_v10, %v2832_v9  ;;  %v3468_v13 = vld [vmem:[#allocation2 + $0xcc] sm:$0xf0]  ;;  %1268 = vmatpush.bf16.msra.mxu1 %v2577_v7 }
   0xa   :  { %v2560_v14 = vld [vmem:[#allocation2 + $0x1c0] sm:$0xf]  ;;  %v3500_v15 = vld [vmem:[#allocation2 + $0x1cc] sm:$0xf0]  ;;  %1282 = vmatpush.bf16.msra.mxu2 %v2705_v8  ;;  %v2433_v16 = vor.u32 %v3468_v13, %v2432_v11 }
   0xb   :  { %v2561_v17 = vor.u32 %v3500_v15, %v2560_v14  ;;  %v2688_v18 = vld [vmem:[#allocation2 + $0x2c0] sm:$0xf]  ;;  %v3532_v19 = vld [vmem:[#allocation2 + $0x2cc] sm:$0xf0]  ;;  %1296 = vmatpush.bf16.msra.mxu3 %v2833_v12 }
   0xc   :  { %v2816_v20 = vld [vmem:[#allocation2 + $0x3c0] sm:$0xf]  ;;  %v2689_v21 = vor.u32 %v3532_v19, %v2688_v18  ;;  %v3564_v22 = vld [vmem:[#allocation2 + $0x3cc] sm:$0xf0]  ;;  %1255 = vmatpush.bf16.msra.mxu0 %v2433_v16 }
   0xd   :  { %v2416_v23 = vld [vmem:[#allocation2 + $0xa0] sm:$0xf]  ;;  %v3464_v24 = vld [vmem:[#allocation2 + $0xac] sm:$0xf0]  ;;  %v2817_v25 = vor.u32 %v3564_v22, %v2816_v20  ;;  %1269 = vmatpush.bf16.msra.mxu1 %v2561_v17 }
   0xe   :  { %v2544_v26 = vld [vmem:[#allocation2 + $0x1a0] sm:$0xf]  ;;  %v3496_v27 = vld [vmem:[#allocation2 + $0x1ac] sm:$0xf0]  ;;  %v2417_v29 = vor.u32 %v3464_v24, %v2416_v23  ;;  %1283 = vmatpush.bf16.msra.mxu2 %v2689_v21 }
   0xf   :  { %v2672_v28 = vld [vmem:[#allocation2 + $0x2a0] sm:$0xf]  ;;  %v3528_v30 = vld [vmem:[#allocation2 + $0x2ac] sm:$0xf0]  ;;  %v2545_v33 = vor.u32 %v3496_v27, %v2544_v26  ;;  %1297 = vmatpush.bf16.msra.mxu3 %v2817_v25 }
  0x10   :  { %v2800_v31 = vld [vmem:[#allocation2 + $0x3a0] sm:$0xf]  ;;  %v3560_v32 = vld [vmem:[#allocation2 + $0x3ac] sm:$0xf0]  ;;  %v2673_v34 = vor.u32 %v3528_v30, %v2672_v28  ;;  %1256 = vmatpush.bf16.msra.mxu0 %v2417_v29 }
  0x11   :  { %v2400_v35 = vld [vmem:[#allocation2 + $0x80] sm:$0xf]  ;;  %v3460_v36 = vld [vmem:[#allocation2 + $0x8c] sm:$0xf0]  ;;  %v2801_v38 = vor.u32 %v3560_v32, %v2800_v31  ;;  %1270 = vmatpush.bf16.msra.mxu1 %v2545_v33  ;;  %v3470_v32 = vld [vmem:[#allocation2 + $0xe4] sm:$0xf] }
  0x12   :  { %v2528_v37 = vld [vmem:[#allocation2 + $0x180] sm:$0xf]  ;;  %v3492_v39 = vld [vmem:[#allocation2 + $0x18c] sm:$0xf0]  ;;  %v2401_v44 = vor.u32 %v3460_v36, %v2400_v35  ;;  %1284 = vmatpush.bf16.msra.mxu2 %v2673_v34  ;;  %v2450_v33 = vld [vmem:[#allocation2 + $0xf0] sm:$0xf0] }
  0x13   :  { %v2656_v40 = vld [vmem:[#allocation2 + $0x280] sm:$0xf]  ;;  %v3524_v41 = vld [vmem:[#allocation2 + $0x28c] sm:$0xf0]  ;;  %v2529_v45 = vor.u32 %v3492_v39, %v2528_v37  ;;  %1298 = vmatpush.bf16.msra.mxu3 %v2801_v38  ;;  %v52_v36 = vld [vmem:[%s4342_s0 + $0x48] sm:$0xff] }
  0x14   :  { %v2784_v42 = vld [vmem:[#allocation2 + $0x380] sm:$0xf]  ;;  %v3556_v43 = vld [vmem:[#allocation2 + $0x38c] sm:$0xf0]  ;;  %v2657_v46 = vor.u32 %v3524_v41, %v2656_v40  ;;  %1257 = vmatpush.bf16.msra.mxu0 %v2401_v44  ;;  %v3502_v41 = vld [vmem:[#allocation2 + $0x1e4] sm:$0xf] }
  0x15   :  { %v2384_v47 = vld [vmem:[#allocation2 + $0x60] sm:$0xf]  ;;  %v3456_v48 = vld [vmem:[#allocation2 + $0x6c] sm:$0xf0]  ;;  %v2785_v50 = vor.u32 %v3556_v43, %v2784_v42  ;;  %1271 = vmatpush.bf16.msra.mxu1 %v2529_v45  ;;  %v50_v43 = vld [vmem:[%s4342_s0 + $0x38] sm:$0xff] }
  0x16   :  { %v2512_v49 = vld [vmem:[#allocation2 + $0x160] sm:$0xf]  ;;  %v3488_v51 = vld [vmem:[#allocation2 + $0x16c] sm:$0xf0]  ;;  %v2385_v56 = vor.u32 %v3456_v48, %v2384_v47  ;;  %1285 = vmatpush.bf16.msra.mxu2 %v2657_v46  ;;  %v2578_v46 = vld [vmem:[#allocation2 + $0x1f0] sm:$0xf0] }
  0x17   :  { %v2640_v52 = vld [vmem:[#allocation2 + $0x260] sm:$0xf]  ;;  %v3520_v53 = vld [vmem:[#allocation2 + $0x26c] sm:$0xf0]  ;;  %v2513_v57 = vor.u32 %v3488_v51, %v2512_v49  ;;  %1299 = vmatpush.bf16.msra.mxu3 %v2785_v50  ;;  %v46_v47 = vld [vmem:[%s4342_s0 + $0x18] sm:$0xff]  ;;  %v2453_v50 = vor.u32 %v3470_v32, %v2450_v33 }
  0x18   :  { %v2768_v54 = vld [vmem:[#allocation2 + $0x360] sm:$0xf]  ;;  %v3552_v55 = vld [vmem:[#allocation2 + $0x36c] sm:$0xf0]  ;;  %v2641_v58 = vor.u32 %v3520_v53, %v2640_v52  ;;  %1258 = vmatpush.bf16.msra.mxu0 %v2385_v56 }
  0x19   :  { %v2368_v59 = vld [vmem:[#allocation2 + $0x40] sm:$0xf]  ;;  %v3452_v60 = vld [vmem:[#allocation2 + $0x4c] sm:$0xf0]  ;;  %v2769_v62 = vor.u32 %v3552_v55, %v2768_v54  ;;  %1272 = vmatpush.bf16.msra.mxu1 %v2513_v57  ;;  %v3466_v57 = vld [vmem:[#allocation2 + $0xc4] sm:$0xf] }
  0x1a   :  { %v2496_v61 = vld [vmem:[#allocation2 + $0x140] sm:$0xf]  ;;  %v3484_v63 = vld [vmem:[#allocation2 + $0x14c] sm:$0xf0]  ;;  %v2369_v4 = vor.u32 %v3452_v60, %v2368_v59  ;;  %1286 = vmatpush.bf16.msra.mxu2 %v2641_v58  ;;  %v2434_v58 = vld [vmem:[#allocation2 + $0xd0] sm:$0xf0] }
  0x1b   :  { %v2624_v0 = vld [vmem:[#allocation2 + $0x240] sm:$0xf]  ;;  %v3516_v1 = vld [vmem:[#allocation2 + $0x24c] sm:$0xf0]  ;;  %v2497_v6 = vor.u32 %v3484_v63, %v2496_v61  ;;  %1300 = vmatpush.bf16.msra.mxu3 %v2769_v62  ;;  %v44_v61 = vld [vmem:[%s4342_s0 + $0x8] sm:$0xff]  ;;  %v2581_v63 = vor.u32 %v3502_v41, %v2578_v46 }
  0x1c   :  { %v2752_v2 = vld [vmem:[#allocation2 + $0x340] sm:$0xf]  ;;  %v3548_v3 = vld [vmem:[#allocation2 + $0x34c] sm:$0xf0]  ;;  %v2625_v7 = vor.u32 %v3516_v1, %v2624_v0  ;;  %1259 = vmatpush.bf16.msra.mxu0 %v2369_v4  ;;  %v3498_v1 = vld [vmem:[#allocation2 + $0x1c4] sm:$0xf]  ;;  %v2437_v4 = vor.u32 %v3466_v57, %v2434_v58 }
  0x1d   :  { %v2352_v5 = vld [vmem:[#allocation2 + $0x20] sm:$0xf]  ;;  %v3448_v8 = vld [vmem:[#allocation2 + $0x2c] sm:$0xf0]  ;;  %v2753_v11 = vor.u32 %v3548_v3, %v2752_v2  ;;  %1273 = vmatpush.bf16.msra.mxu1 %v2497_v6  ;;  %v2562_v2 = vld [vmem:[#allocation2 + $0x1d0] sm:$0xf0] }
  0x1e   :  { %v2480_v9 = vld [vmem:[#allocation2 + $0x120] sm:$0xf]  ;;  %v3480_v10 = vld [vmem:[#allocation2 + $0x12c] sm:$0xf0]  ;;  %v2353_v18 = vor.u32 %v3448_v8, %v2352_v5  ;;  %1287 = vmatpush.bf16.msra.mxu2 %v2625_v7  ;;  %v2514_v41 = vld [vmem:[#allocation2 + $0x170] sm:$0xf0] }
  0x1f   :  { %v2608_v12 = vld [vmem:[#allocation2 + $0x220] sm:$0xf]  ;;  %v3512_v13 = vld [vmem:[#allocation2 + $0x22c] sm:$0xf0]  ;;  %v2481_v23 = vor.u32 %v3480_v10, %v2480_v9  ;;  %1301 = vmatpush.bf16.msra.mxu3 %v2753_v11  ;;  %v3462_v10 = vld [vmem:[#allocation2 + $0xa4] sm:$0xf] }
  0x20   :  { %v2736_v14 = vld [vmem:[#allocation2 + $0x320] sm:$0xf]  ;;  %v3544_v15 = vld [vmem:[#allocation2 + $0x32c] sm:$0xf0]  ;;  %v2609_v24 = vor.u32 %v3512_v13, %v2608_v12  ;;  %1260 = vmatpush.bf16.msra.mxu0 %v2353_v18  ;;  %v2418_v11 = vld [vmem:[#allocation2 + $0xb0] sm:$0xf0]  ;;  %v2565_v12 = vor.u32 %v3498_v1, %v2562_v2 }
  0x21   :  { %v2336_v16 = vld [vmem:[#allocation2] sm:$0xf]  ;;  %v3444_v17 = vld [vmem:[#allocation2 + $0xc] sm:$0xf0]  ;;  %v2737_v28 = vor.u32 %v3544_v15, %v2736_v14  ;;  %1274 = vmatpush.bf16.msra.mxu1 %v2481_v23  ;;  %v3494_v14 = vld [vmem:[#allocation2 + $0x1a4] sm:$0xf] }
  0x22   :  { %v2464_v19 = vld [vmem:[#allocation2 + $0x100] sm:$0xf]  ;;  %v3476_v20 = vld [vmem:[#allocation2 + $0x10c] sm:$0xf0]  ;;  %v2337_v35 = vor.u32 %v3444_v17, %v2336_v16  ;;  %1288 = vmatpush.bf16.msra.mxu2 %v2609_v24  ;;  %v2546_v15 = vld [vmem:[#allocation2 + $0x1b0] sm:$0xf0]  ;;  %v2421_v17 = vor.u32 %v3462_v10, %v2418_v11 }
  0x23   :  { %v2592_v21 = vld [vmem:[#allocation2 + $0x200] sm:$0xf]  ;;  %v3508_v22 = vld [vmem:[#allocation2 + $0x20c] sm:$0xf0]  ;;  %v2465_v39 = vor.u32 %v3476_v20, %v2464_v19  ;;  %1302 = vmatpush.bf16.msra.mxu3 %v2737_v28  ;;  %v2402_v23 = vld [vmem:[#allocation2 + $0x90] sm:$0xf0]  ;;  %v2549_v24 = vor.u32 %v3494_v14, %v2546_v15 }
  0x24   :  { %v2720_v25 = vld [vmem:[#allocation2 + $0x300] sm:$0xf]  ;;  %v3540_v26 = vld [vmem:[#allocation2 + $0x30c] sm:$0xf0]  ;;  %v2593_v40 = vor.u32 %v3508_v22, %v2592_v21  ;;  %1261 = vmatpush.bf16.msra.mxu0 %v2337_v35  ;;  %v3458_v22 = vld [vmem:[#allocation2 + $0x84] sm:$0xf] }
  0x25   :  { %v2960_v27 = vld [vmem:[#allocation2 + $0x4e0] sm:$0xf]  ;;  %v3600_v29 = vld [vmem:[#allocation2 + $0x4ec] sm:$0xf0]  ;;  %v2721_v44 = vor.u32 %v3540_v26, %v2720_v25  ;;  %1275 = vmatpush.bf16.msra.mxu1 %v2465_v39  ;;  %v3490_v26 = vld [vmem:[#allocation2 + $0x184] sm:$0xf] }
  0x26   :  { %v3088_v30 = vld [vmem:[#allocation2 + $0x5e0] sm:$0xf]  ;;  %v3632_v31 = vld [vmem:[#allocation2 + $0x5ec] sm:$0xf0]  ;;  %v2961_v45 = vor.u32 %v3600_v29, %v2960_v27  ;;  %1289 = vmatpush.bf16.msra.mxu2 %v2593_v40  ;;  %v2530_v27 = vld [vmem:[#allocation2 + $0x190] sm:$0xf0]  ;;  %v2405_v29 = vor.u32 %v3458_v22, %v2402_v23 }
  0x27   :  { %v45_v34 = vld [vmem:[%s4342_s0 + $0x10] sm:$0xff]  ;;  %v3104_v37 = vld [vmem:[#allocation2 + $0x600] sm:$0xf]  ;;  %v3089_v49 = vor.u32 %v3632_v31, %v3088_v30  ;;  %1303 = vmatpush.bf16.msra.mxu3 %v2721_v44  ;;  %v3486_v40 = vld [vmem:[#allocation2 + $0x164] sm:$0xf] }
  0x28   :  { %v3636_v38 = vld [vmem:[#allocation2 + $0x60c] sm:$0xf0]  ;;  %v43_v42 = vld [vmem:[%s4342_s0] sm:$0xff]  ;;  %v3812_v54 = vpack.c.bf16 %v52_v36, %v45_v34  ;;  %1310 = vmatpush.bf16.msrb.mxu0 %v2961_v45  ;;  %v2386_v35 = vld [vmem:[#allocation2 + $0x70] sm:$0xf0] }
  0x29   :  { %v53_v48 = vld [vmem:[%s4342_s0 + $0x50] sm:$0xff]  ;;  %v2944_v51 = vld [vmem:[#allocation2 + $0x4c0] sm:$0xf]  ;;  %v3814_v55 = vpack.c.bf16 %v50_v43, %v43_v42  ;;  %v3105_v59 = vor.u32 %v3636_v38, %v3104_v37  ;;  %1324 = vmatpush.bf16.msrb.mxu1 %v3089_v49  ;;  %v3454_v34 = vld [vmem:[#allocation2 + $0x64] sm:$0xf]  ;;  %v2533_v38 = vor.u32 %v3490_v26, %v2530_v27 }
  0x2a   :  { %v3596_v52 = vld [vmem:[#allocation2 + $0x4cc] sm:$0xf0]  ;;  %v3072_v53 = vld [vmem:[#allocation2 + $0x5c0] sm:$0xf]  ;;  %v3816_v60 = vpack.c.bf16 %v53_v48, %v46_v47  ;;  %1290 = vmatmul.bf16.vlgmr.msra.gmra.mxu2 %v3812_v54  ;;  %v56_v37 = vld [vmem:[%s4342_s0 + $0x68] sm:$0xff]  ;;  %v2389_v43 = vor.u32 %v3454_v34, %v2386_v35 }
  0x2b   :  { %v3628_v56 = vld [vmem:[#allocation2 + $0x5cc] sm:$0xf0]  ;;  %v51_v62 = vld [vmem:[%s4342_s0 + $0x40] sm:$0xff]  ;;  %v2945_v0 = vor.u32 %v3596_v52, %v2944_v51  ;;  %1352 = vmatpush.bf16.msrb.mxu3 %v2453_v50  ;;  %1262 = vmatmul.bf16.vlgmr.msra.gmra.mxu0 %v3814_v55  ;;  %v2370_v49 = vld [vmem:[#allocation2 + $0x50] sm:$0xf0]  ;;  %v2517_v51 = vor.u32 %v3486_v40, %v2514_v41 }
  0x2c   :  { %v3073_v3 = vor.u32 %v3628_v56, %v3072_v53  ;;  %v2928_v5 = vld [vmem:[#allocation2 + $0x4a0] sm:$0xf]  ;;  %v3592_v6 = vld [vmem:[#allocation2 + $0x4ac] sm:$0xf0]  ;;  %v3826_v8 = vpack.c.bf16 %v51_v62, %v44_v61  ;;  %1345 = vmatpush.bf16.msrb.mxu2 %v3105_v59  ;;  %1304 = vmatmul.bf16.vlgmr.msra.gmra.mxu3 %v3816_v60  ;;  %v3450_v48 = vld [vmem:[#allocation2 + $0x44] sm:$0xf] }
  0x2d   :  { %v3056_v7 = vld [vmem:[#allocation2 + $0x5a0] sm:$0xf]  ;;  %v3624_v9 = vld [vmem:[#allocation2 + $0x5ac] sm:$0xf0]  ;;  %1311 = vmatpush.bf16.msrb.mxu0 %v2945_v0  ;;  %v2929_v13 = vor.u32 %v3592_v6, %v2928_v5  ;;  %v3482_v53 = vld [vmem:[#allocation2 + $0x144] sm:$0xf]  ;;  %v2373_v58 = vor.u32 %v3450_v48, %v2370_v49 }
  0x2e   :  { %1325 = vmatpush.bf16.msrb.mxu1 %v3073_v3  ;;  %v3057_v16 = vor.u32 %v3624_v9, %v3056_v7  ;;  %v2912_v18 = vld [vmem:[#allocation2 + $0x480] sm:$0xf]  ;;  %v3588_v19 = vld [vmem:[#allocation2 + $0x48c] sm:$0xf0]  ;;  %v2498_v56 = vld [vmem:[#allocation2 + $0x150] sm:$0xf0] }
  0x2f   :  { %1353 = vmatpush.bf16.msrb.mxu3 %v2437_v4  ;;  %v3040_v20 = vld [vmem:[#allocation2 + $0x580] sm:$0xf]  ;;  %1276 = vmatmul.bf16.vlgmr.msra.gmra.mxu1 %v3826_v8  ;;  %v3620_v21 = vld [vmem:[#allocation2 + $0x58c] sm:$0xf0]  ;;  %v2913_v25 = vor.u32 %v3588_v19, %v2912_v18  ;;  %v3446_v0 = vld [vmem:[#allocation2 + $0x24] sm:$0xf]  ;;  %v2501_v4 = vor.u32 %v3482_v53, %v2498_v56 }
  0x30   :  { %1366 = vmatpush.bf16.msra.mxu2 %v2581_v63  ;;  %v3041_v28 = vor.u32 %v3620_v21, %v3040_v20  ;;  %v2896_v30 = vld [vmem:[#allocation2 + $0x460] sm:$0xf]  ;;  %v3584_v31 = vld [vmem:[#allocation2 + $0x46c] sm:$0xf0]  ;;  %v2354_v1 = vld [vmem:[#allocation2 + $0x30] sm:$0xf0] }
  0x31   :  { %1312 = vmatpush.bf16.msrb.mxu0 %v2929_v13  ;;  %v3024_v32 = vld [vmem:[#allocation2 + $0x560] sm:$0xf]  ;;  %v3616_v33 = vld [vmem:[#allocation2 + $0x56c] sm:$0xf0]  ;;  %v2897_v39 = vor.u32 %v3584_v31, %v2896_v30  ;;  %v3478_v2 = vld [vmem:[#allocation2 + $0x124] sm:$0xf]  ;;  %v2357_v11 = vor.u32 %v3446_v0, %v2354_v1 }
  0x32   :  { %1326 = vmatpush.bf16.msrb.mxu1 %v3057_v16  ;;  %v49_v36 = vld [vmem:[%s4342_s0 + $0x30] sm:$0xff]  ;;  %v3025_v42 = vor.u32 %v3616_v33, %v3024_v32  ;;  %v2880_v44 = vld [vmem:[#allocation2 + $0x440] sm:$0xf]  ;;  %v3442_v13 = vld [vmem:[#allocation2 + $0x4] sm:$0xf] }
  0x33   :  { %1354 = vmatpush.bf16.msrb.mxu3 %v2421_v17  ;;  %v3580_v45 = vld [vmem:[#allocation2 + $0x44c] sm:$0xf0]  ;;  %v3008_v46 = vld [vmem:[#allocation2 + $0x540] sm:$0xf]  ;;  %v3836_v50 = vpack.c.bf16 %v56_v37, %v49_v36  ;;  %v2482_v3 = vld [vmem:[#allocation2 + $0x130] sm:$0xf0] }
  0x34   :  { %1367 = vmatpush.bf16.msra.mxu2 %v2565_v12  ;;  %v3612_v47 = vld [vmem:[#allocation2 + $0x54c] sm:$0xf0]  ;;  %v2881_v52 = vor.u32 %v3580_v45, %v2880_v44  ;;  %v2864_v59 = vld [vmem:[#allocation2 + $0x420] sm:$0xf]  ;;  %v2338_v14 = vld [vmem:[#allocation2 + $0x10] sm:$0xf0]  ;;  %v2485_v21 = vor.u32 %v3478_v2, %v2482_v3 }
  0x35   :  { %1313 = vmatpush.bf16.msrb.mxu0 %v2913_v25  ;;  %v3009_v57 = vor.u32 %v3612_v47, %v3008_v46  ;;  %v3576_v61 = vld [vmem:[#allocation2 + $0x42c] sm:$0xf0]  ;;  %v2992_v62 = vld [vmem:[#allocation2 + $0x520] sm:$0xf]  ;;  %v3534_v15 = vld [vmem:[#allocation2 + $0x2e4] sm:$0xf]  ;;  %v2341_v27 = vor.u32 %v3442_v13, %v2338_v14 }
  0x36   :  { %1327 = vmatpush.bf16.msrb.mxu1 %v3041_v28  ;;  %v3608_v63 = vld [vmem:[#allocation2 + $0x52c] sm:$0xf0]  ;;  %v2865_v5 = vor.u32 %v3576_v61, %v2864_v59  ;;  %v2848_v6 = vld [vmem:[#allocation2 + $0x400] sm:$0xf]  ;;  %v2706_v16 = vld [vmem:[#allocation2 + $0x2f0] sm:$0xf0] }
  0x37   :  { %1355 = vmatpush.bf16.msrb.mxu3 %v2405_v29  ;;  %v3572_v7 = vld [vmem:[#allocation2 + $0x40c] sm:$0xf0]  ;;  %v2976_v9 = vld [vmem:[#allocation2 + $0x500] sm:$0xf]  ;;  %v2993_v10 = vor.u32 %v3608_v63, %v2992_v62  ;;  %v3566_v17 = vld [vmem:[#allocation2 + $0x3e4] sm:$0xf]  ;;  %v2709_v31 = vor.u32 %v3534_v15, %v2706_v16 }
  0x38   :  { %1368 = vmatpush.bf16.msra.mxu2 %v2549_v24  ;;  %v3604_v12 = vld [vmem:[#allocation2 + $0x50c] sm:$0xf0]  ;;  %v2834_v18 = vld [vmem:[#allocation2 + $0x3f0] sm:$0xf0]  ;;  %v3598_v19 = vld [vmem:[#allocation2 + $0x4e4] sm:$0xf]  ;;  %v2849_v22 = vor.u32 %v3572_v7, %v2848_v6 }
  0x39   :  { %1314 = vmatpush.bf16.msrb.mxu0 %v2897_v39  ;;  %v2962_v20 = vld [vmem:[#allocation2 + $0x4f0] sm:$0xf0]  ;;  %v47_v23 = vld [vmem:[%s4342_s0 + $0x20] sm:$0xff]  ;;  %v54_v24 = vld [vmem:[%s4342_s0 + $0x58] sm:$0xff]  ;;  %v2977_v26 = vor.u32 %v3604_v12, %v2976_v9  ;;  %v2837_v32 = vor.u32 %v3566_v17, %v2834_v18 }
  0x3a   :  { %1328 = vmatpush.bf16.msrb.mxu1 %v3025_v42  ;;  %3118 = vmatmul.msk.bf16.vlgmr.msrb.gmra.mxu2 %vm1250_vm0, %v3836_v50  ;;  %v3474_v25 = vld [vmem:[#allocation2 + $0x104] sm:$0xf]  ;;  %v2466_v28 = vld [vmem:[#allocation2 + $0x110] sm:$0xf0]  ;;  %v48_v29 = vld [vmem:[%s4342_s0 + $0x28] sm:$0xff]  ;;  %v2965_v36 = vor.u32 %v3598_v19, %v2962_v20  ;;  %v3852_v37 = vpack.c.bf16 %v54_v24, %v47_v23 }
  0x3b   :  { %1356 = vmatpush.bf16.msrb.mxu3 %v2389_v43  ;;  %v55_v30 = vld [vmem:[%s4342_s0 + $0x60] sm:$0xff]  ;;  %v3090_v34 = vld [vmem:[#allocation2 + $0x5f0] sm:$0xf0]  ;;  %v2469_v41 = vor.u32 %v3474_v25, %v2466_v28 }
  0x3c   :  { %1369 = vmatpush.bf16.msra.mxu2 %v2533_v38  ;;  %v3630_v33 = vld [vmem:[#allocation2 + $0x5e4] sm:$0xf]  ;;  %v2690_v38 = vld [vmem:[#allocation2 + $0x2d0] sm:$0xf0]  ;;  %v3854_v42 = vpack.c.bf16 %v55_v30, %v48_v29 }
  0x3d   :  { %1315 = vmatpush.bf16.msrb.mxu0 %v2881_v52  ;;  %v3530_v35 = vld [vmem:[#allocation2 + $0x2c4] sm:$0xf]  ;;  %v2818_v40 = vld [vmem:[#allocation2 + $0x3d0] sm:$0xf0]  ;;  %v3093_v45 = vor.u32 %v3630_v33, %v3090_v34 }
  0x3e   :  { %1329 = vmatpush.bf16.msrb.mxu1 %v3009_v57  ;;  %v3562_v39 = vld [vmem:[#allocation2 + $0x3c4] sm:$0xf]  ;;  %v2946_v44 = vld [vmem:[#allocation2 + $0x4d0] sm:$0xf0]  ;;  %v2693_v46 = vor.u32 %v3530_v35, %v2690_v38 }
  0x3f   :  { %1357 = vmatpush.bf16.msrb.mxu3 %v2373_v58  ;;  %v3594_v43 = vld [vmem:[#allocation2 + $0x4c4] sm:$0xf]  ;;  %v2821_v47 = vor.u32 %v3562_v39, %v2818_v40  ;;  %v3074_v49 = vld [vmem:[#allocation2 + $0x5d0] sm:$0xf0] }
  0x40   :  { %1370 = vmatpush.bf16.msra.mxu2 %v2517_v51  ;;  %v3626_v48 = vld [vmem:[#allocation2 + $0x5c4] sm:$0xf]  ;;  %v2949_v52 = vor.u32 %v3594_v43, %v2946_v44  ;;  %v2674_v53 = vld [vmem:[#allocation2 + $0x2b0] sm:$0xf0] }
  0x41   :  { %1316 = vmatpush.bf16.msrb.mxu0 %v2865_v5  ;;  %v3526_v51 = vld [vmem:[#allocation2 + $0x2a4] sm:$0xf]  ;;  %v2802_v57 = vld [vmem:[#allocation2 + $0x3b0] sm:$0xf0]  ;;  %v3077_v61 = vor.u32 %v3626_v48, %v3074_v49 }
  0x42   :  { %1330 = vmatpush.bf16.msrb.mxu1 %v2993_v10  ;;  %v3558_v56 = vld [vmem:[#allocation2 + $0x3a4] sm:$0xf]  ;;  %v2930_v59 = vld [vmem:[#allocation2 + $0x4b0] sm:$0xf0]  ;;  %v2677_v62 = vor.u32 %v3526_v51, %v2674_v53 }
  0x43   :  { %1358 = vmatpush.bf16.msrb.mxu3 %v2357_v11  ;;  %v3590_v58 = vld [vmem:[#allocation2 + $0x4a4] sm:$0xf]  ;;  %v2805_v63 = vor.u32 %v3558_v56, %v2802_v57  ;;  %v3058_v1 = vld [vmem:[#allocation2 + $0x5b0] sm:$0xf0] }
  0x44   :  { %1371 = vmatpush.bf16.msra.mxu2 %v2501_v4  ;;  %v3622_v0 = vld [vmem:[#allocation2 + $0x5a4] sm:$0xf]  ;;  %v2933_v3 = vor.u32 %v3590_v58, %v2930_v59  ;;  %v2658_v4 = vld [vmem:[#allocation2 + $0x290] sm:$0xf0] }
  0x45   :  { %1317 = vmatpush.bf16.msrb.mxu0 %v2849_v22  ;;  %v3522_v2 = vld [vmem:[#allocation2 + $0x284] sm:$0xf]  ;;  %v2786_v6 = vld [vmem:[#allocation2 + $0x390] sm:$0xf0]  ;;  %v3061_v10 = vor.u32 %v3622_v0, %v3058_v1  ;;  %v2456_v0 = vld [vmem:[#allocation2 + $0xe8] sm:$0xf] }
  0x46   :  { %1331 = vmatpush.bf16.msrb.mxu1 %v2977_v26  ;;  %v3554_v5 = vld [vmem:[#allocation2 + $0x384] sm:$0xf]  ;;  %v2914_v9 = vld [vmem:[#allocation2 + $0x490] sm:$0xf0]  ;;  %v2661_v11 = vor.u32 %v3522_v2, %v2658_v4  ;;  %v3473_v1 = vld [vmem:[#allocation2 + $0xf4] sm:$0xf0] }
  0x47   :  { %1359 = vmatpush.bf16.msrb.mxu3 %v2341_v27  ;;  %v3586_v7 = vld [vmem:[#allocation2 + $0x484] sm:$0xf]  ;;  %v2789_v12 = vor.u32 %v3554_v5, %v2786_v6  ;;  %v3042_v14 = vld [vmem:[#allocation2 + $0x590] sm:$0xf0]  ;;  %v2584_v2 = vld [vmem:[#allocation2 + $0x1e8] sm:$0xf] }
  0x48   :  { %1372 = vmatpush.bf16.msra.mxu2 %v2485_v21  ;;  %1318 = vmatmul.bf16.vlgmr.msrb.gmra.mxu0 %v3852_v37  ;;  %v3618_v13 = vld [vmem:[#allocation2 + $0x584] sm:$0xf]  ;;  %v2917_v16 = vor.u32 %v3586_v7, %v2914_v9  ;;  %v2642_v17 = vld [vmem:[#allocation2 + $0x270] sm:$0xf0]  ;;  %v3505_v4 = vld [vmem:[#allocation2 + $0x1f4] sm:$0xf0] }
  0x49   :  { %1380 = vmatpush.bf16.msra.mxu0 %v2709_v31  ;;  %1332 = vmatmul.bf16.vlgmr.msrb.gmra.mxu1 %v3854_v42  ;;  %v3518_v15 = vld [vmem:[#allocation2 + $0x264] sm:$0xf]  ;;  %v2770_v19 = vld [vmem:[#allocation2 + $0x370] sm:$0xf0]  ;;  %v3045_v22 = vor.u32 %v3618_v13, %v3042_v14  ;;  %v2457_v13 = vor.u32 %v3473_v1, %v2456_v0  ;;  %v2840_v14 = vld [vmem:[#allocation2 + $0x3e8] sm:$0xf] }
  0x4a   :  { %1394 = vmatpush.bf16.msra.mxu1 %v2837_v32  ;;  %1360 = vmatmul.bf16.vlgmr.msrb.gmra.mxu3 %v3814_v55  ;;  %v3550_v18 = vld [vmem:[#allocation2 + $0x364] sm:$0xf]  ;;  %v2898_v21 = vld [vmem:[#allocation2 + $0x470] sm:$0xf0]  ;;  %v2645_v23 = vor.u32 %v3518_v15, %v2642_v17  ;;  %v3569_v15 = vld [vmem:[#allocation2 + $0x3f4] sm:$0xf0]  ;;  %v2585_v17 = vor.u32 %v3505_v4, %v2584_v2 }
  0x4b   :  { %1408 = vmatpush.bf16.msra.mxu3 %v2965_v36  ;;  %v3582_v20 = vld [vmem:[#allocation2 + $0x464] sm:$0xf]  ;;  %v2773_v24 = vor.u32 %v3550_v18, %v2770_v19  ;;  %v3026_v26 = vld [vmem:[#allocation2 + $0x570] sm:$0xf0]  ;;  %v3469_v18 = vld [vmem:[#allocation2 + $0xd4] sm:$0xf0] }
  0x4c   :  { %1373 = vmatpush.bf16.msra.mxu2 %v2469_v41  ;;  %v3614_v25 = vld [vmem:[#allocation2 + $0x564] sm:$0xf]  ;;  %v2901_v28 = vor.u32 %v3582_v20, %v2898_v21  ;;  %v2626_v29 = vld [vmem:[#allocation2 + $0x250] sm:$0xf0]  ;;  %v2712_v20 = vld [vmem:[#allocation2 + $0x2e8] sm:$0xf] }
  0x4d   :  { %1381 = vmatpush.bf16.msra.mxu0 %v2693_v46  ;;  %v3514_v27 = vld [vmem:[#allocation2 + $0x244] sm:$0xf]  ;;  %v2754_v31 = vld [vmem:[#allocation2 + $0x350] sm:$0xf0]  ;;  %v3029_v34 = vor.u32 %v3614_v25, %v3026_v26  ;;  %v3537_v21 = vld [vmem:[#allocation2 + $0x2f4] sm:$0xf0]  ;;  %v2841_v25 = vor.u32 %v3569_v15, %v2840_v14 }
  0x4e   :  { %1395 = vmatpush.bf16.msra.mxu1 %v2821_v47  ;;  %v3546_v30 = vld [vmem:[#allocation2 + $0x344] sm:$0xf]  ;;  %v2882_v33 = vld [vmem:[#allocation2 + $0x450] sm:$0xf0]  ;;  %v2629_v35 = vor.u32 %v3514_v27, %v2626_v29  ;;  %v2824_v27 = vld [vmem:[#allocation2 + $0x3c8] sm:$0xf] }
  0x4f   :  { %1409 = vmatpush.bf16.msra.mxu3 %v2949_v52  ;;  %1374 = vmatmul.bf16.vlgmr.msra.gmra.mxu2 %v3826_v8  ;;  %v3578_v32 = vld [vmem:[#allocation2 + $0x444] sm:$0xf]  ;;  %v2757_v36 = vor.u32 %v3546_v30, %v2754_v31  ;;  %v3010_v39 = vld [vmem:[#allocation2 + $0x550] sm:$0xf0]  ;;  %v2424_v29 = vld [vmem:[#allocation2 + $0xa8] sm:$0xf]  ;;  %v2713_v30 = vor.u32 %v3537_v21, %v2712_v20 }
  0x50   :  { %1422 = vmatpush.bf16.msrb.mxu2 %v3093_v45  ;;  %v3610_v38 = vld [vmem:[#allocation2 + $0x544] sm:$0xf]  ;;  %v2885_v41 = vor.u32 %v3578_v32, %v2882_v33  ;;  %v2610_v43 = vld [vmem:[#allocation2 + $0x230] sm:$0xf0]  ;;  %v3465_v32 = vld [vmem:[#allocation2 + $0xb4] sm:$0xf0] }
  0x51   :  { %1382 = vmatpush.bf16.msra.mxu0 %v2677_v62  ;;  %v3510_v40 = vld [vmem:[#allocation2 + $0x224] sm:$0xf]  ;;  %v2738_v45 = vld [vmem:[#allocation2 + $0x330] sm:$0xf0]  ;;  %v3013_v48 = vor.u32 %v3610_v38, %v3010_v39  ;;  %v2696_v33 = vld [vmem:[#allocation2 + $0x2c8] sm:$0xf] }
  0x52   :  { %1396 = vmatpush.bf16.msra.mxu1 %v2805_v63  ;;  %v3542_v44 = vld [vmem:[#allocation2 + $0x324] sm:$0xf]  ;;  %v2866_v47 = vld [vmem:[#allocation2 + $0x430] sm:$0xf0]  ;;  %v2613_v52 = vor.u32 %v3510_v40, %v2610_v43  ;;  %v2808_v39 = vld [vmem:[#allocation2 + $0x3a8] sm:$0xf]  ;;  %v2425_v40 = vor.u32 %v3465_v32, %v2424_v29 }
  0x53   :  { %1410 = vmatpush.bf16.msra.mxu3 %v2933_v3  ;;  %v3574_v46 = vld [vmem:[#allocation2 + $0x424] sm:$0xf]  ;;  %v2994_v51 = vld [vmem:[#allocation2 + $0x530] sm:$0xf0]  ;;  %v2741_v53 = vor.u32 %v3542_v44, %v2738_v45  ;;  %v2408_v43 = vld [vmem:[#allocation2 + $0x88] sm:$0xf] }
  0x54   :  { %1423 = vmatpush.bf16.msrb.mxu2 %v3077_v61  ;;  %v3606_v49 = vld [vmem:[#allocation2 + $0x524] sm:$0xf]  ;;  %v2594_v57 = vld [vmem:[#allocation2 + $0x210] sm:$0xf0]  ;;  %v2869_v59 = vor.u32 %v3574_v46, %v2866_v47  ;;  %v3461_v46 = vld [vmem:[#allocation2 + $0x94] sm:$0xf0] }
  0x55   :  { %1383 = vmatpush.bf16.msra.mxu0 %v2661_v11  ;;  %v3506_v56 = vld [vmem:[#allocation2 + $0x204] sm:$0xf]  ;;  %v2722_v61 = vld [vmem:[#allocation2 + $0x310] sm:$0xf0]  ;;  %v2997_v3 = vor.u32 %v3606_v49, %v2994_v51  ;;  %v2680_v47 = vld [vmem:[#allocation2 + $0x2a8] sm:$0xf] }
  0x56   :  { %1397 = vmatpush.bf16.msra.mxu1 %v2789_v12  ;;  %v3538_v58 = vld [vmem:[#allocation2 + $0x304] sm:$0xf]  ;;  %v2850_v63 = vld [vmem:[#allocation2 + $0x410] sm:$0xf0]  ;;  %v2597_v7 = vor.u32 %v3506_v56, %v2594_v57  ;;  %v2536_v49 = vld [vmem:[#allocation2 + $0x188] sm:$0xf] }
  0x57   :  { %1411 = vmatpush.bf16.msra.mxu3 %v2917_v16  ;;  %v3570_v62 = vld [vmem:[#allocation2 + $0x404] sm:$0xf]  ;;  %v3106_v6 = vld [vmem:[#allocation2 + $0x610] sm:$0xf0]  ;;  %v2725_v9 = vor.u32 %v3538_v58, %v2722_v61  ;;  %v2440_v16 = vld [vmem:[#allocation2 + $0xc8] sm:$0xf] }
  0x58   :  { %1424 = vmatpush.bf16.msrb.mxu2 %v3061_v10  ;;  %v3634_v5 = vld [vmem:[#allocation2 + $0x604] sm:$0xf]  ;;  %v2978_v11 = vld [vmem:[#allocation2 + $0x510] sm:$0xf0]  ;;  %v2853_v12 = vor.u32 %v3570_v62, %v2850_v63  ;;  %v2441_v26 = vor.u32 %v3469_v18, %v2440_v16  ;;  %v3493_v51 = vld [vmem:[#allocation2 + $0x194] sm:$0xf0] }
  0x59   :  { %1384 = vmatpush.bf16.msra.mxu0 %v2645_v23  ;;  %v3602_v10 = vld [vmem:[#allocation2 + $0x504] sm:$0xf]  ;;  %v3109_v19 = vor.u32 %v3634_v5, %v3106_v6  ;;  %v2568_v23 = vld [vmem:[#allocation2 + $0x1c8] sm:$0xf]  ;;  %v3557_v57 = vld [vmem:[#allocation2 + $0x394] sm:$0xf0]  ;;  %v2537_v61 = vor.u32 %v3493_v51, %v2536_v49 }
  0x5a   :  { %1398 = vmatpush.bf16.msra.mxu1 %v2773_v24  ;;  %v3501_v24 = vld [vmem:[#allocation2 + $0x1d4] sm:$0xf0]  ;;  %v2792_v56 = vld [vmem:[#allocation2 + $0x388] sm:$0xf] }
  0x5b   :  { %1412 = vmatpush.bf16.msra.mxu3 %v2901_v28  ;;  %v3565_v28 = vld [vmem:[#allocation2 + $0x3d4] sm:$0xf0]  ;;  %v2569_v31 = vor.u32 %v3501_v24, %v2568_v23  ;;  %v2392_v58 = vld [vmem:[#allocation2 + $0x68] sm:$0xf] }
  0x5c   :  { %1425 = vmatpush.bf16.msrb.mxu2 %v3045_v22  ;;  %v2981_v22 = vor.u32 %v3602_v10, %v2978_v11  ;;  %v2825_v38 = vor.u32 %v3565_v28, %v2824_v27  ;;  %v3457_v62 = vld [vmem:[#allocation2 + $0x74] sm:$0xf0]  ;;  %v2664_v63 = vld [vmem:[#allocation2 + $0x288] sm:$0xf] }
  0x5d   :  { %1385 = vmatpush.bf16.msra.mxu0 %v2629_v35  ;;  %v2552_v35 = vld [vmem:[#allocation2 + $0x1a8] sm:$0xf]  ;;  %v3525_v0 = vld [vmem:[#allocation2 + $0x294] sm:$0xf0]  ;;  %v2393_v4 = vor.u32 %v3457_v62, %v2392_v58 }
  0x5e   :  { %1399 = vmatpush.bf16.msra.mxu1 %v2757_v36  ;;  %v3497_v36 = vld [vmem:[#allocation2 + $0x1b4] sm:$0xf0]  ;;  %v2520_v1 = vld [vmem:[#allocation2 + $0x168] sm:$0xf] }
  0x5f   :  { %1413 = vmatpush.bf16.msra.mxu3 %v2885_v41  ;;  %v3561_v41 = vld [vmem:[#allocation2 + $0x3b4] sm:$0xf0]  ;;  %v2553_v45 = vor.u32 %v3497_v36, %v2552_v35  ;;  %v2776_v5 = vld [vmem:[#allocation2 + $0x368] sm:$0xf] }
  0x60   :  { %1426 = vmatpush.bf16.msrb.mxu2 %v3029_v34  ;;  %v3533_v34 = vld [vmem:[#allocation2 + $0x2d4] sm:$0xf0]  ;;  %v2504_v14 = vld [vmem:[#allocation2 + $0x148] sm:$0xf] }
  0x61   :  { %1386 = vmatpush.bf16.msra.mxu0 %v2613_v52  ;;  %v2697_v44 = vor.u32 %v3533_v34, %v2696_v33  ;;  %v2809_v52 = vor.u32 %v3561_v41, %v2808_v39  ;;  %v3489_v2 = vld [vmem:[#allocation2 + $0x174] sm:$0xf0]  ;;  %v2760_v18 = vld [vmem:[#allocation2 + $0x348] sm:$0xf] }
  0x62   :  { %1400 = vmatpush.bf16.msra.mxu1 %v2741_v53  ;;  %v2409_v53 = vor.u32 %v3461_v46, %v2408_v43  ;;  %v3553_v6 = vld [vmem:[#allocation2 + $0x374] sm:$0xf0]  ;;  %v2521_v10 = vor.u32 %v3489_v2, %v2520_v1  ;;  %v2360_v20 = vld [vmem:[#allocation2 + $0x28] sm:$0xf] }
  0x63   :  { %1414 = vmatpush.bf16.msra.mxu3 %v2869_v59  ;;  %v3453_v11 = vld [vmem:[#allocation2 + $0x54] sm:$0xf0]  ;;  %v2777_v16 = vor.u32 %v3553_v6, %v2776_v5  ;;  %v2632_v24 = vld [vmem:[#allocation2 + $0x248] sm:$0xf] }
  0x64   :  { %1427 = vmatpush.bf16.msrb.mxu2 %v3013_v48  ;;  %v3529_v48 = vld [vmem:[#allocation2 + $0x2b4] sm:$0xf0]  ;;  %v2744_v29 = vld [vmem:[#allocation2 + $0x328] sm:$0xf] }
  0x65   :  { %1387 = vmatpush.bf16.msra.mxu0 %v2597_v7  ;;  %v2681_v59 = vor.u32 %v3529_v48, %v2680_v47  ;;  %v2376_v7 = vld [vmem:[#allocation2 + $0x48] sm:$0xf]  ;;  %v3485_v15 = vld [vmem:[#allocation2 + $0x154] sm:$0xf0] }
  0x66   :  { %1401 = vmatpush.bf16.msra.mxu1 %v2725_v9  ;;  %v2665_v9 = vor.u32 %v3525_v0, %v2664_v63  ;;  %v3449_v23 = vld [vmem:[#allocation2 + $0x34] sm:$0xf0]  ;;  %v2344_v32 = vld [vmem:[#allocation2 + $0x8] sm:$0xf] }
  0x67   :  { %1415 = vmatpush.bf16.msra.mxu3 %v2853_v12  ;;  %v2648_v12 = vld [vmem:[#allocation2 + $0x268] sm:$0xf]  ;;  %v3481_v27 = vld [vmem:[#allocation2 + $0x134] sm:$0xf0] }
  0x68   :  { %1428 = vmatpush.bf16.msrb.mxu2 %v2997_v3  ;;  %1388 = vmatmul.bf16.vlgmr.msra.gmra.mxu0 %v3812_v54  ;;  %v2793_v3 = vor.u32 %v3557_v57, %v2792_v56  ;;  %v3445_v33 = vld [vmem:[#allocation2 + $0x14] sm:$0xf0]  ;;  %v2472_v36 = vld [vmem:[#allocation2 + $0x108] sm:$0xf]  ;;  %v2458_v57 = vld [vmem:[#allocation2 + $0xf8] sm:$0xf0] }
  0x69   :  { %1443 = vmatpush.bf16.msrb.mxu0 %v3109_v19  ;;  %1402 = vmatmul.bf16.vlgmr.msra.gmra.mxu1 %v3816_v60  ;;  %v3549_v19 = vld [vmem:[#allocation2 + $0x354] sm:$0xf0]  ;;  %v2968_v41 = vld [vmem:[#allocation2 + $0x4e8] sm:$0xf]  ;;  %v2345_v47 = vor.u32 %v3445_v33, %v2344_v32  ;;  %v3459_v33 = vld [vmem:[#allocation2 + $0x8c] sm:$0xf] }
  0x6a   :  { %1450 = vmatpush.bf16.msrb.mxu1 %v2457_v13  ;;  %1416 = vmatmul.bf16.vlgmr.msra.gmra.mxu3 %v3852_v37  ;;  %v3521_v13 = vld [vmem:[#allocation2 + $0x274] sm:$0xf0]  ;;  %v2761_v28 = vor.u32 %v3549_v19, %v2760_v18  ;;  %v2728_v48 = vld [vmem:[#allocation2 + $0x308] sm:$0xf] }
  0x6b   :  { %1464 = vmatpush.bf16.msrb.mxu3 %v2585_v17  ;;  %v2377_v17 = vor.u32 %v3453_v11, %v2376_v7  ;;  %v2649_v21 = vor.u32 %v3521_v13, %v2648_v12  ;;  %v3513_v39 = vld [vmem:[#allocation2 + $0x234] sm:$0xf0]  ;;  %v2952_v58 = vld [vmem:[#allocation2 + $0x4c8] sm:$0xf] }
  0x6c   :  { %1429 = vmatpush.bf16.msrb.mxu2 %v2981_v22  ;;  %v2505_v22 = vor.u32 %v3485_v15, %v2504_v14  ;;  %v3601_v43 = vld [vmem:[#allocation2 + $0x4f4] sm:$0xf0]  ;;  %v3080_v62 = vld [vmem:[#allocation2 + $0x5c8] sm:$0xf]  ;;  %v3503_v15 = vld [vmem:[#allocation2 + $0x1ec] sm:$0xf] }
  0x6d   :  { %1478 = vmatpush.bf16.msra.mxu0 %v2713_v30  ;;  %v2361_v30 = vor.u32 %v3449_v23, %v2360_v20  ;;  %v3633_v46 = vld [vmem:[#allocation2 + $0x5f4] sm:$0xf0]  ;;  %v2969_v56 = vor.u32 %v3601_v43, %v2968_v41  ;;  %v2600_v63 = vld [vmem:[#allocation2 + $0x208] sm:$0xf]  ;;  %v2554_v41 = vld [vmem:[#allocation2 + $0x1b8] sm:$0xf0] }
  0x6e   :  { %1451 = vmatpush.bf16.msrb.mxu1 %v2441_v26  ;;  %v2488_v26 = vld [vmem:[#allocation2 + $0x128] sm:$0xf]  ;;  %v3541_v49 = vld [vmem:[#allocation2 + $0x314] sm:$0xf0] }
  0x6f   :  { %1465 = vmatpush.bf16.msrb.mxu3 %v2569_v31  ;;  %1430 = vmatmul.bf16.vlgmr.msrb.gmra.mxu2 %v3854_v42  ;;  %v3545_v31 = vld [vmem:[#allocation2 + $0x334] sm:$0xf0]  ;;  %v2489_v35 = vor.u32 %v3481_v27, %v2488_v26  ;;  %v2729_v1 = vor.u32 %v3541_v49, %v2728_v48  ;;  %v2936_v11 = vld [vmem:[#allocation2 + $0x4a8] sm:$0xf]  ;;  %v3499_v27 = vld [vmem:[#allocation2 + $0x1cc] sm:$0xf] }
  0x70   :  { %1492 = vmatpush.bf16.msra.mxu2 %v2841_v25  ;;  %v3517_v25 = vld [vmem:[#allocation2 + $0x254] sm:$0xf0]  ;;  %v3032_v43 = vld [vmem:[#allocation2 + $0x568] sm:$0xf]  ;;  %v2394_v48 = vld [vmem:[#allocation2 + $0x78] sm:$0xf0] }
  0x71   :  { %1479 = vmatpush.bf16.msra.mxu0 %v2697_v44  ;;  %v2633_v34 = vor.u32 %v3517_v25, %v2632_v24  ;;  %v2745_v44 = vor.u32 %v3545_v31, %v2744_v29  ;;  %v3509_v0 = vld [vmem:[#allocation2 + $0x214] sm:$0xf0]  ;;  %v2920_v24 = vld [vmem:[#allocation2 + $0x488] sm:$0xf] }
  0x72   :  { %1452 = vmatpush.bf16.msrb.mxu1 %v2425_v40  ;;  %v3477_v40 = vld [vmem:[#allocation2 + $0x114] sm:$0xf0]  ;;  %v2601_v7 = vor.u32 %v3509_v0, %v2600_v63  ;;  %v3048_v29 = vld [vmem:[#allocation2 + $0x588] sm:$0xf]  ;;  %v3451_v63 = vld [vmem:[#allocation2 + $0x4c] sm:$0xf] }
  0x73   :  { %1466 = vmatpush.bf16.msrb.mxu3 %v2553_v45  ;;  %v3096_v45 = vld [vmem:[#allocation2 + $0x5e8] sm:$0xf]  ;;  %v3629_v2 = vld [vmem:[#allocation2 + $0x5d4] sm:$0xf0]  ;;  %v2378_v0 = vld [vmem:[#allocation2 + $0x58] sm:$0xf0] }
  0x74   :  { %1493 = vmatpush.bf16.msra.mxu2 %v2825_v38  ;;  %v2616_v38 = vld [vmem:[#allocation2 + $0x228] sm:$0xf]  ;;  %v3081_v12 = vor.u32 %v3629_v2, %v3080_v62  ;;  %v3593_v13 = vld [vmem:[#allocation2 + $0x4b4] sm:$0xf0] }
  0x75   :  { %1480 = vmatpush.bf16.msra.mxu0 %v2681_v59  ;;  %v2617_v51 = vor.u32 %v3513_v39, %v2616_v38  ;;  %v3597_v59 = vld [vmem:[#allocation2 + $0x4d4] sm:$0xf0]  ;;  %v2937_v20 = vor.u32 %v3593_v13, %v2936_v11  ;;  %v2872_v2 = vld [vmem:[#allocation2 + $0x428] sm:$0xf]  ;;  %v3447_v11 = vld [vmem:[#allocation2 + $0x2c] sm:$0xf] }
  0x76   :  { %1453 = vmatpush.bf16.msrb.mxu1 %v2409_v53  ;;  %v2473_v53 = vor.u32 %v3477_v40, %v2472_v36  ;;  %v2953_v6 = vor.u32 %v3597_v59, %v2952_v58  ;;  %v3625_v18 = vld [vmem:[#allocation2 + $0x5b4] sm:$0xf0]  ;;  %v2904_v36 = vld [vmem:[#allocation2 + $0x468] sm:$0xf]  ;;  %v3495_v40 = vld [vmem:[#allocation2 + $0x1ac] sm:$0xf] }
  0x77   :  { %1467 = vmatpush.bf16.msrb.mxu3 %v2537_v61  ;;  %v3097_v61 = vor.u32 %v3633_v46, %v3096_v45  ;;  %v3589_v26 = vld [vmem:[#allocation2 + $0x494] sm:$0xf0]  ;;  %v2557_v49 = vor.u32 %v3495_v40, %v2554_v41  ;;  %v3016_v58 = vld [vmem:[#allocation2 + $0x548] sm:$0xf]  ;;  %v2362_v13 = vld [vmem:[#allocation2 + $0x38] sm:$0xf0] }
  0x78   :  { %1494 = vmatpush.bf16.msra.mxu2 %v2809_v52  ;;  %3119 = vmatmul.msk.bf16.vlgmr.msrb.gmra.mxu0 %vm1250_vm0, %v3836_v50  ;;  %v3471_v52 = vld [vmem:[#allocation2 + $0xec] sm:$0xf]  ;;  %v2921_v32 = vor.u32 %v3589_v26, %v2920_v24  ;;  %v3585_v39 = vld [vmem:[#allocation2 + $0x474] sm:$0xf0]  ;;  %v2365_v24 = vor.u32 %v3447_v11, %v2362_v13  ;;  %v2842_v26 = vld [vmem:[#allocation2 + $0x3f8] sm:$0xf0] }
  0x79   :  { %1481 = vmatpush.bf16.msra.mxu0 %v2665_v9  ;;  %v2461_v5 = vor.u32 %v3471_v52, %v2458_v57  ;;  %v3467_v9 = vld [vmem:[#allocation2 + $0xcc] sm:$0xf]  ;;  %v2905_v46 = vor.u32 %v3585_v39, %v2904_v36  ;;  %v2538_v57 = vld [vmem:[#allocation2 + $0x198] sm:$0xf0]  ;;  %v3613_v59 = vld [vmem:[#allocation2 + $0x554] sm:$0xf0] }
  0x7a   :  { %1454 = vmatpush.bf16.msrb.mxu1 %v2393_v4  ;;  %v3637_v4 = vld [vmem:[#allocation2 + $0x614] sm:$0xf0]  ;;  %v3479_v39 = vld [vmem:[#allocation2 + $0x12c] sm:$0xf]  ;;  %v2490_v40 = vld [vmem:[#allocation2 + $0x138] sm:$0xf0] }
  0x7b   :  { %1468 = vmatpush.bf16.msrb.mxu3 %v2521_v10  ;;  %v2442_v10 = vld [vmem:[#allocation2 + $0xd8] sm:$0xf0]  ;;  %v3627_v11 = vld [vmem:[#allocation2 + $0x5cc] sm:$0xf] }
  0x7c   :  { %1495 = vmatpush.bf16.msra.mxu2 %v2793_v3  ;;  %v3112_v3 = vld [vmem:[#allocation2 + $0x608] sm:$0xf]  ;;  %v2445_v19 = vor.u32 %v3467_v9, %v2442_v10  ;;  %v3609_v9 = vld [vmem:[#allocation2 + $0x534] sm:$0xf0]  ;;  %v2381_v10 = vor.u32 %v3451_v63, %v2378_v0 }
  0x7d   :  { %1482 = vmatpush.bf16.msra.mxu0 %v2649_v21  ;;  %v3113_v14 = vor.u32 %v3637_v4, %v3112_v3  ;;  %v3463_v21 = vld [vmem:[#allocation2 + $0xac] sm:$0xf]  ;;  %v3017_v3 = vor.u32 %v3613_v59, %v3016_v58  ;;  %v3577_v4 = vld [vmem:[#allocation2 + $0x434] sm:$0xf0]  ;;  %v2474_v58 = vld [vmem:[#allocation2 + $0x118] sm:$0xf0] }
  0x7e   :  { %1455 = vmatpush.bf16.msrb.mxu1 %v2377_v17  ;;  %v3064_v17 = vld [vmem:[#allocation2 + $0x5a8] sm:$0xf]  ;;  %v2810_v59 = vld [vmem:[#allocation2 + $0x3b8] sm:$0xf0] }
  0x7f   :  { %1469 = vmatpush.bf16.msrb.mxu3 %v2505_v22  ;;  %v2426_v22 = vld [vmem:[#allocation2 + $0xb8] sm:$0xf0]  ;;  %v3065_v25 = vor.u32 %v3625_v18, %v3064_v17  ;;  %v2984_v18 = vld [vmem:[#allocation2 + $0x508] sm:$0xf] }
  0x80   :  { %1496 = vmatpush.bf16.msra.mxu2 %v2777_v16  ;;  %v2586_v16 = vld [vmem:[#allocation2 + $0x1f8] sm:$0xf0]  ;;  %v2429_v31 = vor.u32 %v3463_v21, %v2426_v22  ;;  %v3605_v21 = vld [vmem:[#allocation2 + $0x514] sm:$0xf0]  ;;  %v3535_v22 = vld [vmem:[#allocation2 + $0x2ec] sm:$0xf] }
  0x81   :  { %1483 = vmatpush.bf16.msra.mxu0 %v2633_v34  ;;  %v2589_v23 = vor.u32 %v3503_v15, %v2586_v16  ;;  %v2410_v34 = vld [vmem:[#allocation2 + $0x98] sm:$0xf0]  ;;  %v2856_v15 = vld [vmem:[#allocation2 + $0x408] sm:$0xf]  ;;  %v3573_v16 = vld [vmem:[#allocation2 + $0x414] sm:$0xf0] }
  0x82   :  { %1456 = vmatpush.bf16.msrb.mxu1 %v2361_v30  ;;  %v3621_v30 = vld [vmem:[#allocation2 + $0x594] sm:$0xf0]  ;;  %v2413_v45 = vor.u32 %v3459_v33, %v2410_v34  ;;  %v3599_v33 = vld [vmem:[#allocation2 + $0x4ec] sm:$0xf]  ;;  %v2970_v34 = vld [vmem:[#allocation2 + $0x4f8] sm:$0xf0] }
  0x83   :  { %1470 = vmatpush.bf16.msrb.mxu3 %v2489_v35  ;;  %v3049_v38 = vor.u32 %v3621_v30, %v3048_v29  ;;  %v2346_v29 = vld [vmem:[#allocation2 + $0x18] sm:$0xf0] }
  0x84   :  { %1497 = vmatpush.bf16.msra.mxu2 %v2761_v28  ;;  %v2570_v28 = vld [vmem:[#allocation2 + $0x1d8] sm:$0xf0] }
  0x85   :  { %1484 = vmatpush.bf16.msra.mxu0 %v2617_v51  ;;  %v2573_v35 = vor.u32 %v3499_v27, %v2570_v28  ;;  %v2888_v51 = vld [vmem:[#allocation2 + $0x448] sm:$0xf]  ;;  %v2857_v27 = vor.u32 %v3573_v16, %v2856_v15  ;;  %v3443_v28 = vld [vmem:[#allocation2 + $0xc] sm:$0xf]  ;;  %v2922_v16 = vld [vmem:[#allocation2 + $0x498] sm:$0xf0] }
  0x86   :  { %1457 = vmatpush.bf16.msrb.mxu1 %v2345_v47  ;;  %v3455_v47 = vld [vmem:[#allocation2 + $0x6c] sm:$0xf]  ;;  %v2349_v41 = vor.u32 %v3443_v28, %v2346_v29 }
  0x87   :  { %1471 = vmatpush.bf16.msrb.mxu3 %v2473_v53  ;;  %v3581_v53 = vld [vmem:[#allocation2 + $0x454] sm:$0xf0]  ;;  %v3587_v15 = vld [vmem:[#allocation2 + $0x48c] sm:$0xf] }
  0x88   :  { %1498 = vmatpush.bf16.msra.mxu2 %v2745_v44  ;;  %v3617_v44 = vld [vmem:[#allocation2 + $0x574] sm:$0xf0]  ;;  %v2889_v62 = vor.u32 %v3581_v53, %v2888_v51  ;;  %v3527_v51 = vld [vmem:[#allocation2 + $0x2ac] sm:$0xf] }
  0x89   :  { %1458 = vmatmul.bf16.vlgmr.msrb.gmra.mxu1 %v3814_v55  ;;  %1485 = vmatpush.bf16.msra.mxu0 %v2601_v7  ;;  %v3033_v52 = vor.u32 %v3617_v44, %v3032_v43  ;;  %v3000_v7 = vld [vmem:[#allocation2 + $0x528] sm:$0xf]  ;;  %v3563_v43 = vld [vmem:[#allocation2 + $0x3cc] sm:$0xf]  ;;  %v2826_v44 = vld [vmem:[#allocation2 + $0x3d8] sm:$0xf0] }
  0x8a   :  { %1506 = vmatpush.bf16.msra.mxu1 %v2969_v56  ;;  %1472 = vmatmul.bf16.vlgmr.msrb.gmra.mxu3 %v3826_v8  ;;  %v3491_v56 = vld [vmem:[#allocation2 + $0x18c] sm:$0xf]  ;;  %v3001_v17 = vor.u32 %v3609_v9, %v3000_v7  ;;  %v2829_v53 = vor.u32 %v3563_v43, %v2826_v44  ;;  %v2666_v7 = vld [vmem:[#allocation2 + $0x298] sm:$0xf0] }
  0x8b   :  { %1520 = vmatpush.bf16.msra.mxu3 %v3097_v61  ;;  %v2397_v61 = vor.u32 %v3455_v47, %v2394_v48  ;;  %v2493_v48 = vor.u32 %v3479_v39, %v2490_v40  ;;  %v3555_v9 = vld [vmem:[#allocation2 + $0x38c] sm:$0xf]  ;;  %v2618_v44 = vld [vmem:[#allocation2 + $0x238] sm:$0xf0] }
  0x8c   :  { %1499 = vmatpush.bf16.msra.mxu2 %v2729_v1  ;;  %1486 = vmatmul.bf16.vlgmr.msra.gmra.mxu0 %v3812_v54  ;;  %v2541_v1 = vor.u32 %v3491_v56, %v2538_v57  ;;  %v3559_v56 = vld [vmem:[#allocation2 + $0x3ac] sm:$0xf] }
  0x8d   :  { %1541 = vmatpush.bf16.msrb.mxu0 %v3113_v14  ;;  %v3475_v57 = vld [vmem:[#allocation2 + $0x10c] sm:$0xf] }
  0x8e   :  { %1507 = vmatpush.bf16.msra.mxu1 %v2953_v6  ;;  %v2522_v6 = vld [vmem:[#allocation2 + $0x178] sm:$0xf0]  ;;  %v3579_v39 = vld [vmem:[#allocation2 + $0x44c] sm:$0xf] }
  0x8f   :  { %1521 = vmatpush.bf16.msra.mxu3 %v3081_v12  ;;  %1500 = vmatmul.bf16.vlgmr.msra.gmra.mxu2 %v3816_v60  ;;  %v2873_v12 = vor.u32 %v3577_v4, %v2872_v2  ;;  %v3591_v2 = vld [vmem:[#allocation2 + $0x4ac] sm:$0xf]  ;;  %v2813_v4 = vor.u32 %v3559_v56, %v2810_v59  ;;  %v2874_v56 = vld [vmem:[#allocation2 + $0x438] sm:$0xf0] }
  0x90   :  { %1548 = vmatpush.bf16.msrb.mxu2 %v2461_v5  ;;  %v3487_v5 = vld [vmem:[#allocation2 + $0x16c] sm:$0xf] }
  0x91   :  { %1562 = vmatpush.bf16.msra.mxu0 %v2589_v23  ;;  %v2525_v14 = vor.u32 %v3487_v5, %v2522_v6  ;;  %v2714_v23 = vld [vmem:[#allocation2 + $0x2f8] sm:$0xf0]  ;;  %v3523_v6 = vld [vmem:[#allocation2 + $0x28c] sm:$0xf] }
  0x92   :  { %1508 = vmatpush.bf16.msra.mxu1 %v2937_v20  ;;  %v2506_v20 = vld [vmem:[#allocation2 + $0x158] sm:$0xf0]  ;;  %v3511_v43 = vld [vmem:[#allocation2 + $0x22c] sm:$0xf] }
  0x93   :  { %1522 = vmatpush.bf16.msra.mxu3 %v3065_v25  ;;  %v3567_v25 = vld [vmem:[#allocation2 + $0x3ec] sm:$0xf] }
  0x94   :  { %1549 = vmatpush.bf16.msrb.mxu2 %v2445_v19  ;;  %v3483_v19 = vld [vmem:[#allocation2 + $0x14c] sm:$0xf]  ;;  %v2845_v36 = vor.u32 %v3567_v25, %v2842_v26 }
  0x95   :  { %1563 = vmatpush.bf16.msra.mxu0 %v2573_v35  ;;  %v2509_v30 = vor.u32 %v3483_v19, %v2506_v20  ;;  %v3531_v35 = vld [vmem:[#allocation2 + $0x2cc] sm:$0xf] }
  0x96   :  { %1509 = vmatpush.bf16.msra.mxu1 %v2921_v32  ;;  %v2717_v32 = vor.u32 %v3535_v22, %v2714_v23  ;;  %v3519_v19 = vld [vmem:[#allocation2 + $0x26c] sm:$0xf]  ;;  %v3066_v23 = vld [vmem:[#allocation2 + $0x5b8] sm:$0xf0] }
  0x97   :  { %1523 = vmatpush.bf16.msra.mxu3 %v3049_v38  ;;  %v2698_v38 = vld [vmem:[#allocation2 + $0x2d8] sm:$0xf0]  ;;  %v3551_v20 = vld [vmem:[#allocation2 + $0x36c] sm:$0xf] }
  0x98   :  { %1550 = vmatpush.bf16.msrb.mxu2 %v2429_v31  ;;  %v2985_v31 = vor.u32 %v3605_v21, %v2984_v18  ;;  %v2701_v47 = vor.u32 %v3531_v35, %v2698_v38  ;;  %v2778_v21 = vld [vmem:[#allocation2 + $0x378] sm:$0xf0]  ;;  %v3623_v22 = vld [vmem:[#allocation2 + $0x5ac] sm:$0xf] }
  0x99   :  { %1564 = vmatpush.bf16.msra.mxu0 %v2557_v49  ;;  %v2954_v49 = vld [vmem:[#allocation2 + $0x4d8] sm:$0xf0]  ;;  %v3583_v26 = vld [vmem:[#allocation2 + $0x46c] sm:$0xf]  ;;  %v2781_v28 = vor.u32 %v3551_v20, %v2778_v21  ;;  %v3069_v29 = vor.u32 %v3623_v22, %v3066_v23  ;;  %v3172_v23 = vld [vmem:[%s4345_s3 + $0x60] sm:$0xf] }
  0x9a   :  { %1510 = vmatpush.bf16.msra.mxu1 %v2905_v46  ;;  %v3595_v46 = vld [vmem:[#allocation2 + $0x4cc] sm:$0xf]  ;;  %v3050_v35 = vld [vmem:[#allocation2 + $0x598] sm:$0xf0] }
  0x9b   :  { %1524 = vmatpush.bf16.msra.mxu3 %v3033_v52  ;;  %v2682_v52 = vld [vmem:[#allocation2 + $0x2b8] sm:$0xf0]  ;;  %v2957_v63 = vor.u32 %v3595_v46, %v2954_v49 }
  0x9c   :  { %1551 = vmatpush.bf16.msrb.mxu2 %v2413_v45  ;;  %3120 = vmatmul.msk.bf16.vlgmr.msrb.gmra.mxu0 %vm1250_vm0, %v3836_v50  ;;  %v2973_v45 = vor.u32 %v3599_v33, %v2970_v34  ;;  %v2685_v0 = vor.u32 %v3527_v51, %v2682_v52  ;;  %v2762_v33 = vld [vmem:[#allocation2 + $0x358] sm:$0xf0]  ;;  %v3619_v34 = vld [vmem:[#allocation2 + $0x58c] sm:$0xf]  ;;  %v3879_v51 = vld [vmem:[%s4344_s2] sm:$0xf]  ;;  %v2621_v52 = vor.u32 %v3511_v43, %v2618_v44 }
  0x9d   :  { %1565 = vmatpush.bf16.msra.mxu0 %v2541_v1  ;;  %v2477_v1 = vor.u32 %v3475_v57, %v2474_v58  ;;  %v2746_v46 = vld [vmem:[#allocation2 + $0x338] sm:$0xf0]  ;;  %v3507_v57 = vld [vmem:[#allocation2 + $0x20c] sm:$0xf] }
  0x9e   :  { %1511 = vmatpush.bf16.msra.mxu1 %v2889_v62  ;;  %v3098_v62 = vld [vmem:[#allocation2 + $0x5f8] sm:$0xf0] }
  0x9f   :  { %1525 = vmatpush.bf16.msra.mxu3 %v3017_v3  ;;  %v2938_v3 = vld [vmem:[#allocation2 + $0x4b8] sm:$0xf0] }
  0xa0   :  { %1552 = vmatpush.bf16.msrb.mxu2 %v2397_v61  ;;  %v3631_v61 = vld [vmem:[#allocation2 + $0x5ec] sm:$0xf]  ;;  %v2941_v13 = vor.u32 %v3591_v2, %v2938_v3  ;;  %v3180_v2 = vld [vmem:[%s4345_s3 + $0x70] sm:$0xf]  ;;  %v3002_v20 = vld [vmem:[#allocation2 + $0x538] sm:$0xf0] }
  0xa1   :  { %1566 = vmatpush.bf16.msra.mxu0 %v2525_v14  ;;  %v3101_v5 = vor.u32 %v3631_v61, %v3098_v62  ;;  %v2669_v14 = vor.u32 %v3523_v6, %v2666_v7  ;;  %v2602_v62 = vld [vmem:[#allocation2 + $0x218] sm:$0xf0]  ;;  %v3611_v3 = vld [vmem:[#allocation2 + $0x54c] sm:$0xf]  ;;  %v3653_v7 = vld [vmem:[%s4345_s3 + $0x74] sm:$0xf0] }
  0xa2   :  { %1512 = vmatpush.bf16.msra.mxu1 %v2873_v12  ;;  %v3082_v12 = vld [vmem:[#allocation2 + $0x5d8] sm:$0xf0] }
  0xa3   :  { %1526 = vmatpush.bf16.msra.mxu3 %v3001_v17  ;;  %v3085_v18 = vor.u32 %v3627_v11, %v3082_v12  ;;  %v2605_v11 = vor.u32 %v3507_v57, %v2602_v62  ;;  %v3571_v12 = vld [vmem:[#allocation2 + $0x40c] sm:$0xf]  ;;  %v3148_v57 = vld [vmem:[%s4345_s3 + $0x30] sm:$0xf] }
  0xa4   :  { %1553 = vmatpush.bf16.msrb.mxu2 %v2381_v10  ;;  %v2794_v10 = vld [vmem:[#allocation2 + $0x398] sm:$0xf0]  ;;  %v3212_v62 = vld [vmem:[%s4345_s3 + $0xb0] sm:$0xf] }
  0xa5   :  { %1567 = vmatpush.bf16.msra.mxu0 %v2509_v30  ;;  %v2797_v17 = vor.u32 %v3555_v9, %v2794_v10  ;;  %v3515_v30 = vld [vmem:[#allocation2 + $0x24c] sm:$0xf]  ;;  %v3244_v9 = vld [vmem:[%s4345_s3 + $0xf0] sm:$0xf]  ;;  %v3669_v10 = vld [vmem:[%s4345_s3 + $0xf4] sm:$0xf0] }
  0xa6   :  { %1513 = vmatpush.bf16.msra.mxu1 %v2857_v27  ;;  %v2906_v27 = vld [vmem:[#allocation2 + $0x478] sm:$0xf0]  ;;  %v3245_v21 = vor.u32 %v3669_v10, %v3244_v9  ;;  %v3204_v9 = vld [vmem:[%s4345_s3 + $0xa0] sm:$0xf]  ;;  %v3659_v10 = vld [vmem:[%s4345_s3 + $0xa4] sm:$0xf0] }
  0xa7   :  { %1527 = vmatpush.bf16.msra.mxu3 %v2985_v31  ;;  %v2634_v31 = vld [vmem:[#allocation2 + $0x258] sm:$0xf0] }
  0xa8   :  { %1554 = vmatpush.bf16.msrb.mxu2 %v2365_v24  ;;  %v2925_v24 = vor.u32 %v3587_v15, %v2922_v16  ;;  %v2637_v38 = vor.u32 %v3515_v30, %v2634_v31  ;;  %v1263_v58 = vpop.f32.mrf.mxu0  ;;  %v3603_v31 = vld [vmem:[#allocation2 + $0x50c] sm:$0xf] }
  0xa9   :  { %1514 = vmatmul.bf16.vlgmr.msra.gmra.mxu1 %v3852_v37  ;;  %1568 = vmatpush.bf16.msra.mxu0 %v2493_v48  ;;  %v3034_v48 = vld [vmem:[#allocation2 + $0x578] sm:$0xf0] }
  0xaa   :  { %1576 = vmatpush.bf16.msrb.mxu1 %v2717_v32  ;;  %1528 = vmatmul.bf16.vlgmr.msra.gmra.mxu3 %v3854_v42  ;;  %v3547_v32 = vld [vmem:[#allocation2 + $0x34c] sm:$0xf] }
  0xab   :  { %1590 = vmatpush.bf16.msrb.mxu3 %v2845_v36  ;;  %v2909_v36 = vor.u32 %v3583_v26, %v2906_v27  ;;  %v2765_v40 = vor.u32 %v3547_v32, %v2762_v33  ;;  %v3236_v26 = vld [vmem:[%s4345_s3 + $0xe0] sm:$0xf]  ;;  %v3667_v27 = vld [vmem:[%s4345_s3 + $0xe4] sm:$0xf0]  ;;  %v2986_v32 = vld [vmem:[#allocation2 + $0x518] sm:$0xf0] }
  0xac   :  { %1555 = vmatpush.bf16.msrb.mxu2 %v2349_v41  ;;  %v3053_v41 = vor.u32 %v3619_v34, %v3050_v35  ;;  %v3164_v34 = vld [vmem:[%s4345_s3 + $0x50] sm:$0xf]  ;;  %v3649_v35 = vld [vmem:[%s4345_s3 + $0x54] sm:$0xf0]  ;;  %v2989_v43 = vor.u32 %v3603_v31, %v2986_v32  ;;  %v3655_v31 = vld [vmem:[%s4345_s3 + $0x84] sm:$0xf0] }
  0xad   :  { %1569 = vmatpush.bf16.msra.mxu0 %v2477_v1  ;;  %v1277_v1 = vpop.f32.mrf.mxu1  ;;  %v3668_v32 = vld [vmem:[%s4345_s3 + $0xf4] sm:$0xf] }
  0xae   :  { %1577 = vmatpush.bf16.msrb.mxu1 %v2701_v47  ;;  %v3615_v47 = vld [vmem:[#allocation2 + $0x56c] sm:$0xf] }
  0xaf   :  { %1591 = vmatpush.bf16.msrb.mxu3 %v2829_v53  ;;  %1556 = vmatmul.bf16.vlgmr.msrb.gmra.mxu2 %v3814_v55  ;;  %v2650_v55 = vld [vmem:[#allocation2 + $0x278] sm:$0xf0]  ;;  %v3575_v53 = vld [vmem:[#allocation2 + $0x42c] sm:$0xf]  ;;  %v3037_v61 = vor.u32 %v3615_v47, %v3034_v48  ;;  %v3220_v48 = vld [vmem:[%s4345_s3 + $0xc0] sm:$0xf] }
  0xb0   :  { %1604 = vmatpush.bf16.msra.mxu2 %v2973_v45  ;;  %1570 = vmatmul.bf16.vlgmr.msra.gmra.mxu0 %v3826_v8  ;;  %v2653_v25 = vor.u32 %v3519_v19, %v2650_v55  ;;  %v2890_v8 = vld [vmem:[#allocation2 + $0x458] sm:$0xf0]  ;;  %v3543_v45 = vld [vmem:[#allocation2 + $0x32c] sm:$0xf]  ;;  %v2877_v6 = vor.u32 %v3575_v53, %v2874_v56  ;;  %v3181_v19 = vor.u32 %v3653_v7, %v3180_v2  ;;  %v1265_v33 = vpop.f32.mrf.mxu0 }
  0xb1   :  { %1618 = vmatpush.bf16.msrb.mxu0 %v3101_v5  ;;  %v2893_v49 = vor.u32 %v3579_v39, %v2890_v8  ;;  %v2749_v59 = vor.u32 %v3543_v45, %v2746_v46  ;;  %v3884_v5 = vpop.f32.mrf.mxu2  ;;  %v3607_v55 = vld [vmem:[#allocation2 + $0x52c] sm:$0xf]  ;;  %v3228_v39 = vld [vmem:[%s4345_s3 + $0xd0] sm:$0xf]  ;;  %v3165_v45 = vor.u32 %v3649_v35, %v3164_v34  ;;  %v3647_v46 = vld [vmem:[%s4345_s3 + $0x44] sm:$0xf0] }
  0xb2   :  { %1578 = vmatpush.bf16.msrb.mxu1 %v2685_v0  ;;  %v2730_v0 = vld [vmem:[#allocation2 + $0x318] sm:$0xf0] }
  0xb3   :  { %1592 = vmatpush.bf16.msrb.mxu3 %v2813_v4  ;;  %v3018_v4 = vld [vmem:[#allocation2 + $0x558] sm:$0xf0] }
  0xb4   :  { %1605 = vmatpush.bf16.msra.mxu2 %v2957_v63  ;;  %v3539_v63 = vld [vmem:[#allocation2 + $0x30c] sm:$0xf]  ;;  %v3021_v16 = vor.u32 %v3611_v3, %v3018_v4 }
  0xb5   :  { %1619 = vmatpush.bf16.msrb.mxu0 %v3085_v18  ;;  %v2733_v15 = vor.u32 %v3539_v63, %v2730_v0  ;;  %v3114_v18 = vld [vmem:[#allocation2 + $0x618] sm:$0xf0]  ;;  %v3661_v63 = vld [vmem:[%s4345_s3 + $0xb4] sm:$0xf0] }
  0xb6   :  { %1579 = vmatpush.bf16.msrb.mxu1 %v2669_v14  ;;  %v262_v14 = vperm.slane %v3879_v51, 0  ;;  %v3213_v7 = vor.u32 %v3661_v63, %v3212_v62  ;;  %v3222_v62 = vld [vmem:[%s4345_s3 + $0xc8] sm:$0xf0] }
  0xb7   :  { %1593 = vmatpush.bf16.msrb.mxu3 %v2797_v17  ;;  %v3635_v17 = vld [vmem:[#allocation2 + $0x60c] sm:$0xf] }
  0xb8   :  { %1606 = vmatpush.bf16.msra.mxu2 %v2941_v13  ;;  %v2858_v13 = vld [vmem:[#allocation2 + $0x418] sm:$0xf0]  ;;  %v1266_v44 = vadd.f32 %v1265_v33, %v262_v14 }
  0xb9   :  { %1620 = vmatpush.bf16.msrb.mxu0 %v3069_v29  ;;  %v2861_v22 = vor.u32 %v3571_v12, %v2858_v13  ;;  %v3005_v29 = vor.u32 %v3607_v55, %v3002_v20  ;;  %v3196_v55 = vld [vmem:[%s4345_s3 + $0x90] sm:$0xf]  ;;  %v3657_v20 = vld [vmem:[%s4345_s3 + $0x94] sm:$0xf0]  ;;  %v3246_v33 = vld [vmem:[%s4345_s3 + $0xf8] sm:$0xf0] }
  0xba   :  { %1580 = vmatpush.bf16.msrb.mxu1 %v2653_v25  ;;  %v3117_v25 = vor.u32 %v3635_v17, %v3114_v18  ;;  %v3205_v17 = vor.u32 %v3659_v10, %v3204_v9  ;;  %v3214_v9 = vld [vmem:[%s4345_s3 + $0xb8] sm:$0xf0]  ;;  %v3685_v10 = vld [vmem:[%s4345_s3 + $0x174] sm:$0xf0] }
  0xbb   :  { %1594 = vmatpush.bf16.msrb.mxu3 %v2781_v28  ;;  %v1264_v28 = vadd.f32 %v1263_v58, %v262_v14  ;;  %v3645_v58 = vld [vmem:[%s4345_s3 + $0x34] sm:$0xf0] }
  0xbc   :  { %1607 = vmatpush.bf16.msra.mxu2 %v2925_v24  ;;  %v3651_v24 = vld [vmem:[%s4345_s3 + $0x64] sm:$0xf0]  ;;  %v3149_v3 = vor.u32 %v3645_v58, %v3148_v57  ;;  %v3646_v57 = vld [vmem:[%s4345_s3 + $0x44] sm:$0xf]  ;;  %v3158_v58 = vld [vmem:[%s4345_s3 + $0x48] sm:$0xf0] }
  0xbd   :  { %1621 = vmatpush.bf16.msrb.mxu0 %v3053_v41  ;;  %v3173_v30 = vor.u32 %v3651_v24, %v3172_v23  ;;  %v1278_v8 = vadd.f32 %v1277_v1, %v1264_v28  ;;  %v1293_v41 = vpop.f32.mrf.mxu2  ;;  %v3197_v28 = vor.u32 %v3657_v20, %v3196_v55  ;;  %v3206_v55 = vld [vmem:[%s4345_s3 + $0xa8] sm:$0xf0]  ;;  %v3300_v20 = vld [vmem:[%s4345_s3 + $0x160] sm:$0xf] }
  0xbe   :  { %1581 = vmatpush.bf16.msrb.mxu1 %v2637_v38  ;;  %v1279_v38 = vpop.f32.mrf.mxu1 }
  0xbf   :  { %1595 = vmatpush.bf16.msrb.mxu3 %v2765_v40  ;;  %v1305_v40 = vpop.f32.mrf.mxu3 }
  0xc0   :  { %1608 = vmatpush.bf16.msra.mxu2 %v2909_v36  ;;  %v3237_v36 = vor.u32 %v3667_v27, %v3236_v26  ;;  %v3639_v26 = vld [vmem:[%s4345_s3 + $0x4] sm:$0xf0]  ;;  %v3652_v27 = vld [vmem:[%s4345_s3 + $0x74] sm:$0xf] }
  0xc1   :  { %1622 = vmatpush.bf16.msrb.mxu0 %v3037_v61 }
  0xc2   :  { %1582 = vmatpush.bf16.msrb.mxu1 %v2621_v52  ;;  %v1280_v52 = vadd.f32 %v1279_v38, %v1266_v44  ;;  %v3666_v44 = vld [vmem:[%s4345_s3 + $0xe4] sm:$0xf] }
  0xc3   :  { %1596 = vmatpush.bf16.msrb.mxu3 %v2749_v59 }
  0xc4   :  { %1609 = vmatpush.bf16.msra.mxu2 %v2893_v49  ;;  %v3663_v49 = vld [vmem:[%s4345_s3 + $0xc4] sm:$0xf0]  ;;  %v1294_v2 = vadd.f32 %v1293_v41, %v1280_v52  ;;  %v3249_v41 = vor.u32 %v3668_v32, %v3246_v33  ;;  %v3230_v52 = vld [vmem:[%s4345_s3 + $0xd8] sm:$0xf0]  ;;  %v3292_v32 = vld [vmem:[%s4345_s3 + $0x150] sm:$0xf] }
  0xc5   :  { %1623 = vmatpush.bf16.msrb.mxu0 %v3021_v16  ;;  %v1319_v56 = vpop.f32.mrf.mxu0  ;;  %v3221_v59 = vor.u32 %v3663_v49, %v3220_v48  ;;  %v1347_v1 = vpop.f32.mrf.mxu2  ;;  %v3641_v16 = vld [vmem:[%s4345_s3 + $0x14] sm:$0xf0]  ;;  %v3166_v48 = vld [vmem:[%s4345_s3 + $0x58] sm:$0xf0] }
  0xc6   :  { %1583 = vmatpush.bf16.msrb.mxu1 %v2605_v11  ;;  %v1333_v61 = vpop.f32.mrf.mxu1 }
  0xc7   :  { %1597 = vmatpush.bf16.msrb.mxu3 %v2733_v15  ;;  %v1307_v4 = vpop.f32.mrf.mxu3  ;;  %v3132_v15 = vld [vmem:[%s4345_s3 + $0x10] sm:$0xf] }
  0xc8   :  { %1610 = vmatpush.bf16.msra.mxu2 %v2877_v6  ;;  %v3140_v6 = vld [vmem:[%s4345_s3 + $0x20] sm:$0xf]  ;;  %v1308_v11 = vadd.f32 %v1307_v4, %v1294_v2  ;;  %v3644_v2 = vld [vmem:[%s4345_s3 + $0x34] sm:$0xf] }
  0xc9   :  { %1584 = vmatmul.bf16.vlgmr.msrb.gmra.mxu1 %v3812_v54  ;;  %v3665_v54 = vld [vmem:[%s4345_s3 + $0xd4] sm:$0xf0]  ;;  %1624 = vmatpush.bf16.msrb.mxu0 %v3005_v29 }
  0xca   :  { %2062 = vmatpush.bf16.msra.mxu1 %v3245_v21  ;;  %1598 = vmatmul.bf16.vlgmr.msrb.gmra.mxu3 %v3816_v60  ;;  %v3156_v60 = vld [vmem:[%s4345_s3 + $0x40] sm:$0xf]  ;;  %v3229_v47 = vor.u32 %v3665_v54, %v3228_v39 }
  0xcb   :  { %2048 = vmatpush.bf16.msra.mxu3 %v3181_v19  ;;  %v3157_v53 = vor.u32 %v3647_v46, %v3156_v60 }
  0xcc   :  { %1611 = vmatpush.bf16.msra.mxu2 %v2861_v22  ;;  %v3133_v22 = vor.u32 %v3641_v16, %v3132_v15  ;;  %v3642_v16 = vld [vmem:[%s4345_s3 + $0x24] sm:$0xf] }
  0xcd   :  { %1625 = vmatpush.bf16.msrb.mxu0 %v2989_v43  ;;  %v1321_v14 = vpop.f32.mrf.mxu0  ;;  %v1349_v24 = vpop.f32.mrf.mxu2 }
  0xce   :  { %2063 = vmatpush.bf16.msra.mxu1 %v3237_v36  ;;  %v1322_v18 = vadd.f32 %v1321_v14, %v1308_v11  ;;  %v1335_v19 = vpop.f32.mrf.mxu1 }
  0xcf   :  { %2049 = vmatpush.bf16.msra.mxu3 %v3173_v30  ;;  %1612 = vmatmul.bf16.vlgmr.msra.gmra.mxu2 %v3852_v37  ;;  %v1292_v37 = vadd.f32 %v3884_v5, %v1278_v8  ;;  %v3188_v30 = vld [vmem:[%s4345_s3 + $0x80] sm:$0xf]  ;;  %v1361_v54 = vpop.f32.mrf.mxu3  ;;  %v3650_v8 = vld [vmem:[%s4345_s3 + $0x64] sm:$0xf] }
  0xd0   :  { %1639 = vmatpush.bf16.msrb.mxu2 %v3117_v25  ;;  %1626 = vmatmul.bf16.vlgmr.msrb.gmra.mxu0 %v3854_v42  ;;  %v3643_v42 = vld [vmem:[%s4345_s3 + $0x24] sm:$0xf0]  ;;  %v1336_v21 = vadd.f32 %v1335_v19, %v1322_v18  ;;  %v3124_v25 = vld [vmem:[%s4345_s3] sm:$0xf]  ;;  %v3189_v39 = vor.u32 %v3655_v31, %v3188_v30  ;;  %v3658_v19 = vld [vmem:[%s4345_s3 + $0xa4] sm:$0xf] }
  0xd1   :  { %v1306_v0 = vadd.f32 %v1305_v40, %v1292_v37  ;;  %v3141_v12 = vor.u32 %v3643_v42, %v3140_v6  ;;  %v3125_v35 = vor.u32 %v3639_v26, %v3124_v25  ;;  %v3174_v40 = vld [vmem:[%s4345_s3 + $0x68] sm:$0xf0]  ;;  %v3664_v37 = vld [vmem:[%s4345_s3 + $0xd4] sm:$0xf]  ;;  %v3198_v31 = vld [vmem:[%s4345_s3 + $0x98] sm:$0xf0] }
  0xd2   :  { %2064 = vmatpush.bf16.msra.mxu1 %v3229_v47  ;;  %v1350_v29 = vadd.f32 %v1349_v24, %v1336_v21  ;;  %v3177_v46 = vor.u32 %v3650_v8, %v3174_v40  ;;  %v3648_v47 = vld [vmem:[%s4345_s3 + $0x54] sm:$0xf] }
  0xd3   :  { %2050 = vmatpush.bf16.msra.mxu3 %v3165_v45  ;;  %v1320_v5 = vadd.f32 %v1319_v56, %v1306_v0  ;;  %v3238_v45 = vld [vmem:[%s4345_s3 + $0xe8] sm:$0xf0]  ;;  %v263_v56 = vperm.slane %v3879_v51, 1  ;;  %v3161_v0 = vor.u32 %v3646_v57, %v3158_v58  ;;  %v3640_v26 = vld [vmem:[%s4345_s3 + $0x14] sm:$0xf] }
  0xd4   :  { %v1650_v34 = vmax.f32 %v1350_v29, 0.0  ;;  %v3241_v49 = vor.u32 %v3666_v44, %v3238_v45  ;;  %v3656_v30 = vld [vmem:[%s4345_s3 + $0x94] sm:$0xf]  ;;  %v3654_v44 = vld [vmem:[%s4345_s3 + $0x84] sm:$0xf] }
  0xd5   :  { %v1334_v13 = vadd.f32 %v1333_v61, %v1320_v5  ;;  %v1375_v60 = vpop.f32.mrf.mxu2  ;;  %v3662_v61 = vld [vmem:[%s4345_s3 + $0xc4] sm:$0xf]  ;;  %v3308_v5 = vld [vmem:[%s4345_s3 + $0x170] sm:$0xf]  ;;  %v3201_v8 = vor.u32 %v3656_v30, %v3198_v31  ;;  %v3190_v45 = vld [vmem:[%s4345_s3 + $0x88] sm:$0xf0] }
  0xd6   :  { %2065 = vmatpush.bf16.msra.mxu1 %v3221_v59  ;;  %v3233_v59 = vor.u32 %v3664_v37, %v3230_v52  ;;  %v3225_v4 = vor.u32 %v3662_v61, %v3222_v62  ;;  %v3309_v11 = vor.u32 %v3685_v10, %v3308_v5  ;;  %v3679_v37 = vld [vmem:[%s4345_s3 + $0x144] sm:$0xf0]  ;;  %v3276_v57 = vld [vmem:[%s4345_s3 + $0x130] sm:$0xf]  ;;  %v3677_v58 = vld [vmem:[%s4345_s3 + $0x134] sm:$0xf0] }
  0xd7   :  { %2051 = vmatpush.bf16.msra.mxu3 %v3157_v53  ;;  %v1348_v23 = vadd.f32 %v1347_v1, %v1334_v13  ;;  %v3169_v53 = vor.u32 %v3648_v47, %v3166_v48  ;;  %v1363_v63 = vpop.f32.mrf.mxu3  ;;  %v1362_v1 = vadd.f32 %v1361_v54, %v263_v56  ;;  %v3126_v54 = vld [vmem:[%s4345_s3 + $0x8] sm:$0xf0]  ;;  %v3193_v48 = vor.u32 %v3654_v44, %v3190_v45  ;;  %v3673_v10 = vld [vmem:[%s4345_s3 + $0x114] sm:$0xf0]  ;;  %v3372_v31 = vld [vmem:[%s4345_s3 + $0x1f0] sm:$0xf] }
  0xd8   :  { %v1364_v14 = vadd.f32 %v1363_v63, %v263_v56  ;;  %2076 = vmatpush.bf16.msra.mxu2 %v3309_v11  ;;  %v3268_v63 = vld [vmem:[%s4345_s3 + $0x120] sm:$0xf]  ;;  %v3672_v45 = vld [vmem:[%s4345_s3 + $0x114] sm:$0xf] }
  0xd9   :  { %v1646_v36 = vmax.f32 %v1348_v23, 0.0  ;;  %v1376_v13 = vadd.f32 %v1375_v60, %v1362_v1 }
  0xda   :  { %2066 = vmatpush.bf16.msra.mxu1 %v3213_v7  ;;  %v3660_v7 = vld [vmem:[%s4345_s3 + $0xb4] sm:$0xf] }
  0xdb   :  { %2052 = vmatpush.bf16.msra.mxu3 %v3149_v3  ;;  %v4005_v43 = vpack.c.bf16 %v1650_v34, %v1646_v36  ;;  %v3150_v3 = vld [vmem:[%s4345_s3 + $0x38] sm:$0xf0]  ;;  %v3217_v18 = vor.u32 %v3660_v7, %v3214_v9  ;;  %v3260_v9 = vld [vmem:[%s4345_s3 + $0x110] sm:$0xf] }
  0xdc   :  { %v3261_v11 = vor.u32 %v3673_v10, %v3260_v9 }
  0xdd   :  { %v1377_v42 = vpop.f32.mrf.mxu2 }
  0xde   :  { %2067 = vmatpush.bf16.msra.mxu1 %v3205_v17  ;;  %v3142_v17 = vld [vmem:[%s4345_s3 + $0x28] sm:$0xf0]  ;;  %v1378_v24 = vadd.f32 %v1377_v42, %v1364_v14 }
  0xdf   :  { %2053 = vmatpush.bf16.msra.mxu3 %v3141_v12  ;;  %3121 = vmatmul.msk.bf16.vlgmr.msrb.gmra.mxu2 %vm1250_vm0, %v3836_v50  ;;  %v3182_v50 = vld [vmem:[%s4345_s3 + $0x78] sm:$0xf0]  ;;  %v3153_v12 = vor.u32 %v3644_v2, %v3150_v3  ;;  %v3145_v21 = vor.u32 %v3642_v16, %v3142_v17 }
  0xe0   :  { %v3185_v38 = vor.u32 %v3652_v27, %v3182_v50  ;;  %v3134_v27 = vld [vmem:[%s4345_s3 + $0x18] sm:$0xf0] }
  0xe1   :  { %v3137_v34 = vor.u32 %v3640_v26, %v3134_v27  ;;  %v3310_v16 = vld [vmem:[%s4345_s3 + $0x178] sm:$0xf0] }
  0xe2   :  { %2068 = vmatpush.bf16.msra.mxu1 %v3197_v28  ;;  %v3209_v28 = vor.u32 %v3658_v19, %v3206_v55  ;;  %v3302_v19 = vld [vmem:[%s4345_s3 + $0x168] sm:$0xf0] }
  0xe3   :  { %2054 = vmatpush.bf16.msra.mxu3 %v3133_v22  ;;  %v3683_v22 = vld [vmem:[%s4345_s3 + $0x164] sm:$0xf0] }
  0xe4   :  { %v3301_v29 = vor.u32 %v3683_v22, %v3300_v20  ;;  %v3680_v20 = vld [vmem:[%s4345_s3 + $0x154] sm:$0xf] }
  0xe5   :  { %v1389_v6 = vpop.f32.mrf.mxu0 }
  0xe6   :  { %2069 = vmatpush.bf16.msra.mxu1 %v3189_v39  ;;  %v1403_v15 = vpop.f32.mrf.mxu1  ;;  %v1390_v23 = vadd.f32 %v1389_v6, %v1376_v13  ;;  %2077 = vmatpush.bf16.msra.mxu2 %v3301_v29  ;;  %v3638_v39 = vld [vmem:[%s4345_s3 + $0x4] sm:$0xf]  ;;  %v3671_v13 = vld [vmem:[%s4345_s3 + $0x104] sm:$0xf0]  ;;  %v3676_v29 = vld [vmem:[%s4345_s3 + $0x134] sm:$0xf] }
  0xe7   :  { %2055 = vmatpush.bf16.msra.mxu3 %v3125_v35  ;;  %v3681_v35 = vld [vmem:[%s4345_s3 + $0x154] sm:$0xf0]  ;;  %v3129_v60 = vor.u32 %v3638_v39, %v3126_v54  ;;  %v3364_v54 = vld [vmem:[%s4345_s3 + $0x1e0] sm:$0xf] }
  0xe8   :  { %v1404_v36 = vadd.f32 %v1403_v15, %v1390_v23  ;;  %v3293_v40 = vor.u32 %v3681_v35, %v3292_v32  ;;  %v3684_v15 = vld [vmem:[%s4345_s3 + $0x174] sm:$0xf]  ;;  %v3701_v32 = vld [vmem:[%s4345_s3 + $0x1f4] sm:$0xf0]  ;;  %v3674_v35 = vld [vmem:[%s4345_s3 + $0x124] sm:$0xf] }
  0xe9   :  { %v3313_v17 = vor.u32 %v3684_v15, %v3310_v16 }
  0xea   :  { %2118 = vmatpush.bf16.msrb.mxu1 %v3249_v41  ;;  %2056 = vmatmul.bf16.vlgmr.msra.gmra.mxu3 %v4005_v43 }
  0xeb   :  { %2104 = vmatpush.bf16.msrb.mxu3 %v3185_v38  ;;  %2078 = vmatpush.bf16.msra.mxu2 %v3293_v40 }
  0xed   :  { %v1417_v25 = vpop.f32.mrf.mxu3  ;;  %v1391_v50 = vpop.f32.mrf.mxu0 }
  0xee   :  { %2119 = vmatpush.bf16.msrb.mxu1 %v3241_v49  ;;  %v1392_v38 = vadd.f32 %v1391_v50, %v1378_v24  ;;  %v1405_v41 = vpop.f32.mrf.mxu1  ;;  %v3284_v49 = vld [vmem:[%s4345_s3 + $0x140] sm:$0xf]  ;;  %v3678_v24 = vld [vmem:[%s4345_s3 + $0x144] sm:$0xf]  ;;  %v3278_v50 = vld [vmem:[%s4345_s3 + $0x138] sm:$0xf0] }
  0xef   :  { %2105 = vmatpush.bf16.msrb.mxu3 %v3177_v46  ;;  %v1418_v46 = vadd.f32 %v1417_v25, %v1404_v36  ;;  %v3285_v56 = vor.u32 %v3679_v37, %v3284_v49  ;;  %v3286_v25 = vld [vmem:[%s4345_s3 + $0x148] sm:$0xf0]  ;;  %v3281_v30 = vor.u32 %v3676_v29, %v3278_v50  ;;  %v3697_v37 = vld [vmem:[%s4345_s3 + $0x1d4] sm:$0xf0] }
  0xf0   :  { %v1406_v47 = vadd.f32 %v1405_v41, %v1392_v38  ;;  %v3289_v27 = vor.u32 %v3678_v24, %v3286_v25  ;;  %v3270_v36 = vld [vmem:[%s4345_s3 + $0x128] sm:$0xf0]  ;;  %v3316_v24 = vld [vmem:[%s4345_s3 + $0x180] sm:$0xf]  ;;  %v3687_v25 = vld [vmem:[%s4345_s3 + $0x184] sm:$0xf0] }
  0xf1   :  { %2079 = vmatpush.bf16.msra.mxu2 %v3285_v56  ;;  %v3273_v39 = vor.u32 %v3674_v35, %v3270_v36  ;;  %v3366_v35 = vld [vmem:[%s4345_s3 + $0x1e8] sm:$0xf0] }
  0xf2   :  { %2120 = vmatpush.bf16.msrb.mxu1 %v3233_v59  ;;  %v1431_v33 = vpop.f32.mrf.mxu2  ;;  %v3277_v59 = vor.u32 %v3677_v58, %v3276_v57  ;;  %v3670_v58 = vld [vmem:[%s4345_s3 + $0x104] sm:$0xf] }
  0xf3   :  { %2106 = vmatpush.bf16.msrb.mxu3 %v3169_v53  ;;  %v1432_v61 = vadd.f32 %v1431_v33, %v1418_v46  ;;  %v264_v33 = vperm.slane %v3879_v51, 2  ;;  %v3356_v46 = vld [vmem:[%s4345_s3 + $0x1d0] sm:$0xf] }
  0xf4   :  { %v3357_v56 = vor.u32 %v3697_v37, %v3356_v46  ;;  %v3342_v46 = vld [vmem:[%s4345_s3 + $0x1b8] sm:$0xf0]  ;;  %v265_v37 = vperm.slane %v3879_v51, 3 }
  0xf5   :  { %v1419_v52 = vpop.f32.mrf.mxu3  ;;  %v1445_v53 = vpop.f32.mrf.mxu0  ;;  %2080 = vmatpush.bf16.msra.mxu2 %v3277_v59  ;;  %v3254_v59 = vld [vmem:[%s4345_s3 + $0x108] sm:$0xf0]  ;;  %v3326_v51 = vld [vmem:[%s4345_s3 + $0x198] sm:$0xf0] }
  0xf6   :  { %2121 = vmatpush.bf16.msrb.mxu1 %v3225_v4  ;;  %v1420_v62 = vadd.f32 %v1419_v52, %v1406_v47  ;;  %v1446_v3 = vadd.f32 %v1445_v53, %v1432_v61  ;;  %v3257_v61 = vor.u32 %v3670_v58, %v3254_v59  ;;  %v3688_v59 = vld [vmem:[%s4345_s3 + $0x194] sm:$0xf] }
  0xf7   :  { %2107 = vmatpush.bf16.msrb.mxu3 %v3161_v0  ;;  %v3675_v0 = vld [vmem:[%s4345_s3 + $0x124] sm:$0xf0] }
  0xf8   :  { %v3269_v2 = vor.u32 %v3675_v0, %v3268_v63  ;;  %v1647_v42 = vmax.f32 %v1446_v3, 0.0  ;;  %v3695_v63 = vld [vmem:[%s4345_s3 + $0x1c4] sm:$0xf0] }
  0xfa   :  { %2122 = vmatpush.bf16.msrb.mxu1 %v3217_v18  ;;  %v1433_v1 = vpop.f32.mrf.mxu2  ;;  %2081 = vmatpush.bf16.msra.mxu2 %v3269_v2  ;;  %v3682_v18 = vld [vmem:[%s4345_s3 + $0x164] sm:$0xf] }
  0xfb   :  { %2108 = vmatpush.bf16.msrb.mxu3 %v3153_v12  ;;  %v1434_v4 = vadd.f32 %v1433_v1, %v1420_v62  ;;  %v3305_v55 = vor.u32 %v3682_v18, %v3302_v19  ;;  %v3348_v62 = vld [vmem:[%s4345_s3 + $0x1c0] sm:$0xf]  ;;  %v3324_v19 = vld [vmem:[%s4345_s3 + $0x190] sm:$0xf] }
  0xfc   :  { %v3349_v2 = vor.u32 %v3695_v63, %v3348_v62  ;;  %v3329_v62 = vor.u32 %v3688_v59, %v3326_v51  ;;  %v3686_v63 = vld [vmem:[%s4345_s3 + $0x184] sm:$0xf] }
  0xfd   :  { %v1447_v5 = vpop.f32.mrf.mxu0 }
  0xfe   :  { %2123 = vmatpush.bf16.msrb.mxu1 %v3209_v28  ;;  %v1448_v6 = vadd.f32 %v1447_v5, %v1434_v4  ;;  %2082 = vmatpush.bf16.msra.mxu2 %v3261_v11  ;;  %v3340_v5 = vld [vmem:[%s4345_s3 + $0x1b0] sm:$0xf] }
  0xff   :  { %2109 = vmatpush.bf16.msrb.mxu3 %v3145_v21  ;;  %v3294_v21 = vld [vmem:[%s4345_s3 + $0x158] sm:$0xf0] }
 0x100   :  { %v1651_v7 = vmax.f32 %v1448_v6, 0.0  ;;  %v3297_v23 = vor.u32 %v3680_v20, %v3294_v21  ;;  %v3693_v6 = vld [vmem:[%s4345_s3 + $0x1b4] sm:$0xf0] }
 0x101   :  { %v3341_v9 = vor.u32 %v3693_v6, %v3340_v5 }
 0x102   :  { %2124 = vmatpush.bf16.msrb.mxu1 %v3201_v8  ;;  %v1655_v12 = vpack.c.bf16 %v1651_v7, %v1647_v42  ;;  %v3699_v8 = vld [vmem:[%s4345_s3 + $0x1e4] sm:$0xf0] }
 0x103   :  { %2110 = vmatpush.bf16.msrb.mxu3 %v3137_v34  ;;  %v3373_v34 = vor.u32 %v3701_v32, %v3372_v31  ;;  %v3365_v41 = vor.u32 %v3699_v8, %v3364_v54  ;;  %v3374_v31 = vld [vmem:[%s4345_s3 + $0x1f8] sm:$0xf0] }
 0x104   :  { %2070 = vmatmul.bf16.vlgmr.msra.gmra.mxu1 %v1655_v12 }
 0x105   :  { %2090 = vmatpush.bf16.msra.mxu0 %v3373_v34  ;;  %v3698_v34 = vld [vmem:[%s4345_s3 + $0x1e4] sm:$0xf] }
 0x106   :  { %2125 = vmatpush.bf16.msrb.mxu1 %v3193_v48  ;;  %v1459_v22 = vpop.f32.mrf.mxu1  ;;  %v3369_v36 = vor.u32 %v3698_v34, %v3366_v35  ;;  %v3713_v34 = vld [vmem:[%s4347_s5 + $0x58] sm:$0xff]  ;;  %v3712_v35 = vld [vmem:[%s4347_s5 + $0x50] sm:$0xff] }
 0x107   :  { %2111 = vmatpush.bf16.msrb.mxu3 %v3129_v60  ;;  %v1460_v40 = vadd.f32 %v1459_v22, %v264_v33  ;;  %v3262_v60 = vld [vmem:[%s4345_s3 + $0x118] sm:$0xf0] }
 0x108   :  { %v3265_v49 = vor.u32 %v3672_v45, %v3262_v60  ;;  %v3692_v60 = vld [vmem:[%s4345_s3 + $0x1b4] sm:$0xf] }
 0x109   :  { %v1487_v26 = vpop.f32.mrf.mxu0  ;;  %2091 = vmatpush.bf16.msra.mxu0 %v3365_v41  ;;  %v3694_v41 = vld [vmem:[%s4345_s3 + $0x1c4] sm:$0xf] }
 0x10a   :  { %2112 = vmatmul.bf16.vlgmr.msrb.gmra.mxu3 %v4005_v43  ;;  %v3252_v43 = vld [vmem:[%s4345_s3 + $0x100] sm:$0xf] }
 0x10b   :  { %v3253_v14 = vor.u32 %v3671_v13, %v3252_v43  ;;  %v3332_v43 = vld [vmem:[%s4345_s3 + $0x1a0] sm:$0xf]  ;;  %v3691_v13 = vld [vmem:[%s4345_s3 + $0x1a4] sm:$0xf0] }
 0x10c   :  { %v3333_v16 = vor.u32 %v3691_v13, %v3332_v43 }
 0x10d   :  { %2083 = vmatpush.bf16.msra.mxu2 %v3253_v14  ;;  %v1473_v28 = vpop.f32.mrf.mxu3  ;;  %2092 = vmatpush.bf16.msra.mxu0 %v3357_v56  ;;  %v3690_v56 = vld [vmem:[%s4345_s3 + $0x1a4] sm:$0xf] }
 0x10e   :  { %v1461_v38 = vpop.f32.mrf.mxu1  ;;  %v1474_v52 = vadd.f32 %v1473_v28, %v1460_v40 }
 0x10f   :  { %v1462_v53 = vadd.f32 %v1461_v38, %v264_v33  ;;  %v3696_v38 = vld [vmem:[%s4345_s3 + $0x1d4] sm:$0xf] }
 0x110   :  { %v1488_v0 = vadd.f32 %v1487_v26, %v1474_v52 }
 0x111   :  { %2132 = vmatpush.bf16.msrb.mxu2 %v3313_v17  ;;  %v1489_v44 = vpop.f32.mrf.mxu0  ;;  %2093 = vmatpush.bf16.msra.mxu0 %v3349_v2 }
 0x112   :  { %v1501_v47 = vpop.f32.mrf.mxu2 }
 0x113   :  { %v1502_v42 = vadd.f32 %v1501_v47, %v1488_v0  ;;  %v3345_v47 = vor.u32 %v3692_v60, %v3342_v46  ;;  %v3318_v0 = vld [vmem:[%s4345_s3 + $0x188] sm:$0xf0] }
 0x114   :  { %2126 = vmatmul.bf16.vlgmr.msrb.gmra.mxu1 %v1655_v12 }
 0x115   :  { %2133 = vmatpush.bf16.msrb.mxu2 %v3305_v55  ;;  %v1475_v48 = vpop.f32.mrf.mxu3  ;;  %2094 = vmatpush.bf16.msra.mxu0 %v3341_v9  ;;  %v3689_v55 = vld [vmem:[%s4345_s3 + $0x194] sm:$0xf0] }
 0x116   :  { %v1476_v1 = vadd.f32 %v1475_v48, %v1462_v53  ;;  %v3325_v22 = vor.u32 %v3689_v55, %v3324_v19 }
 0x118   :  { %v1490_v7 = vadd.f32 %v1489_v44, %v1476_v1  ;;  %v3350_v44 = vld [vmem:[%s4345_s3 + $0x1c8] sm:$0xf0] }
 0x119   :  { %2134 = vmatpush.bf16.msrb.mxu2 %v3297_v23  ;;  %v1543_v3 = vpop.f32.mrf.mxu0  ;;  %2095 = vmatpush.bf16.msra.mxu0 %v3333_v16  ;;  %v3353_v45 = vor.u32 %v3694_v41, %v3350_v44 }
 0x11a   :  { %v1503_v10 = vpop.f32.mrf.mxu2 }
 0x11b   :  { %v1504_v14 = vadd.f32 %v1503_v10, %v1490_v7 }
 0x11d   :  { %2135 = vmatpush.bf16.msrb.mxu2 %v3289_v27  ;;  %2096 = vmatpush.bf16.msra.mxu0 %v3325_v22  ;;  %v3317_v27 = vor.u32 %v3687_v25, %v3316_v24  ;;  %v3708_v24 = vld [vmem:[%s4347_s5 + $0x30] sm:$0xff]  ;;  %v3707_v25 = vld [vmem:[%s4347_s5 + $0x28] sm:$0xff] }
 0x121   :  { %2136 = vmatpush.bf16.msrb.mxu2 %v3281_v30  ;;  %v1545_v23 = vpop.f32.mrf.mxu0  ;;  %v3700_v30 = vld [vmem:[%s4345_s3 + $0x1f4] sm:$0xf]  ;;  %2097 = vmatpush.bf16.msra.mxu0 %v3317_v27  ;;  %v3705_v27 = vld [vmem:[%s4347_s5 + $0x18] sm:$0xff] }
 0x122   :  { %v3377_v32 = vor.u32 %v3700_v30, %v3374_v31  ;;  %v3703_v30 = vld [vmem:[%s4347_s5 + $0x8] sm:$0xff] }
 0x123   :  { %v3715_v31 = vld [vmem:[%s4347_s5 + $0x68] sm:$0xff] }
 0x125   :  { %2137 = vmatpush.bf16.msrb.mxu2 %v3273_v39  ;;  %2146 = vmatpush.bf16.msrb.mxu0 %v3377_v32  ;;  %v3358_v39 = vld [vmem:[%s4345_s3 + $0x1d8] sm:$0xf0]  ;;  %v3702_v32 = vld [vmem:[%s4347_s5] sm:$0xff] }
 0x126   :  { %v1515_v57 = vpop.f32.mrf.mxu1  ;;  %v3361_v54 = vor.u32 %v3696_v38, %v3358_v39 }
 0x127   :  { %v1516_v11 = vadd.f32 %v1515_v57, %v1502_v42  ;;  %v3334_v57 = vld [vmem:[%s4345_s3 + $0x1a8] sm:$0xf0] }
 0x128   :  { %v3337_v58 = vor.u32 %v3690_v56, %v3334_v57 }
 0x129   :  { %2138 = vmatpush.bf16.msrb.mxu2 %v3265_v49  ;;  %2147 = vmatpush.bf16.msrb.mxu0 %v3369_v36 }
 0x12d   :  { %2139 = vmatpush.bf16.msrb.mxu2 %v3257_v61  ;;  %v1529_v4 = vpop.f32.mrf.mxu3  ;;  %v1571_v8 = vpop.f32.mrf.mxu0  ;;  %2148 = vmatpush.bf16.msrb.mxu0 %v3361_v54  ;;  %v3711_v54 = vld [vmem:[%s4347_s5 + $0x48] sm:$0xff] }
 0x12e   :  { %v1517_v12 = vpop.f32.mrf.mxu1  ;;  %v1530_v15 = vadd.f32 %v1529_v4, %v1516_v11  ;;  %v3321_v4 = vor.u32 %v3686_v63, %v3318_v0 }
 0x12f   :  { %v1518_v17 = vadd.f32 %v1517_v12, %v1504_v14 }
 0x130   :  { %v1544_v20 = vadd.f32 %v1543_v3, %v1530_v15 }
 0x131   :  { %2149 = vmatpush.bf16.msrb.mxu0 %v3353_v45 }
 0x132   :  { %v1648_v28 = vmax.f32 %v1544_v20, 0.0  ;;  %v1557_v50 = vpop.f32.mrf.mxu2 }
 0x133   :  { %v1558_v61 = vadd.f32 %v1557_v50, %v265_v37  ;;  %v3716_v50 = vld [vmem:[%s4347_s5 + $0x70] sm:$0xff] }
 0x135   :  { %v1531_v18 = vpop.f32.mrf.mxu3  ;;  %2150 = vmatpush.bf16.msrb.mxu0 %v3345_v47  ;;  %v1573_v52 = vpop.f32.mrf.mxu0  ;;  %v1572_v3 = vadd.f32 %v1571_v8, %v1558_v61  ;;  %v1722_v8 = vld [vmem:[%s4346_s4] sm:$0x3] }
 0x136   :  { %v1532_v21 = vadd.f32 %v1531_v18, %v1518_v17  ;;  %v1724_v41 = vperm.slane %v1722_v8, 0  ;;  %v1725_v0 = vperm.slane %v1722_v8, 1 }
 0x138   :  { %v1546_v26 = vadd.f32 %v1545_v23, %v1532_v21  ;;  %v3709_v23 = vld [vmem:[%s4347_s5 + $0x38] sm:$0xff] }
 0x139   :  { %2151 = vmatpush.bf16.msrb.mxu0 %v3337_v58  ;;  %2298 = vmatpush.bf16.msra.mxu3 %v3709_v23 }
 0x13a   :  { %v1652_v29 = vmax.f32 %v1546_v26, 0.0  ;;  %v1559_v40 = vpop.f32.mrf.mxu2  ;;  %v3706_v26 = vld [vmem:[%s4347_s5 + $0x20] sm:$0xff] }
 0x13b   :  { %v1560_v1 = vadd.f32 %v1559_v40, %v265_v37  ;;  %v3710_v40 = vld [vmem:[%s4347_s5 + $0x40] sm:$0xff] }
 0x13c   :  { %v1656_v33 = vpack.c.bf16 %v1652_v29, %v1648_v28  ;;  %v3717_v28 = vld [vmem:[%s4347_s5 + $0x78] sm:$0xff]  ;;  %v3704_v29 = vld [vmem:[%s4347_s5 + $0x10] sm:$0xff] }
 0x13d   :  { %2152 = vmatpush.bf16.msrb.mxu0 %v3329_v62  ;;  %v1574_v42 = vadd.f32 %v1573_v52, %v1560_v1  ;;  %2299 = vmatpush.bf16.msra.mxu3 %v3708_v24 }
 0x13e   :  { %2084 = vmatmul.bf16.vlgmr.msra.gmra.mxu2 %v1656_v33  ;;  %2312 = vmatpush.bf16.msra.mxu1 %v3717_v28 }
 0x141   :  { %2153 = vmatpush.bf16.msrb.mxu0 %v3321_v4  ;;  %2300 = vmatpush.bf16.msra.mxu3 %v3707_v25 }
 0x142   :  { %2313 = vmatpush.bf16.msra.mxu1 %v3716_v50 }
 0x145   :  { %2301 = vmatpush.bf16.msra.mxu3 %v3706_v26 }
 0x146   :  { %v1585_v48 = vpop.f32.mrf.mxu1  ;;  %2314 = vmatpush.bf16.msra.mxu1 %v3715_v31 }
 0x147   :  { %v1586_v7 = vadd.f32 %v1585_v48, %v1572_v3 }
 0x149   :  { %2302 = vmatpush.bf16.msra.mxu3 %v3705_v27 }
 0x14d   :  { %v1599_v53 = vpop.f32.mrf.mxu3  ;;  %v1627_v6 = vpop.f32.mrf.mxu0  ;;  %2303 = vmatpush.bf16.msra.mxu3 %v3704_v29 }
 0x14e   :  { %2140 = vmatmul.bf16.vlgmr.msrb.gmra.mxu2 %v1656_v33  ;;  %v1587_v5 = vpop.f32.mrf.mxu1  ;;  %v1600_v10 = vadd.f32 %v1599_v53, %v1586_v7  ;;  %v3714_v33 = vld [vmem:[%s4347_s5 + $0x60] sm:$0xff] }
 0x14f   :  { %v1588_v11 = vadd.f32 %v1587_v5, %v1574_v42  ;;  %2315 = vmatpush.bf16.msra.mxu1 %v3714_v33 }
 0x151   :  { %2304 = vmatpush.bf16.msra.mxu3 %v3703_v30 }
 0x152   :  { %v1613_v49 = vpop.f32.mrf.mxu2 }
 0x153   :  { %v1614_v13 = vadd.f32 %v1613_v49, %v1600_v10  ;;  %2316 = vmatpush.bf16.msra.mxu1 %v3713_v34 }
 0x155   :  { %v1601_v9 = vpop.f32.mrf.mxu3  ;;  %v1629_v15 = vpop.f32.mrf.mxu0  ;;  %v1628_v16 = vadd.f32 %v1627_v6, %v1614_v13  ;;  %2305 = vmatpush.bf16.msra.mxu3 %v3702_v32 }
 0x156   :  { %v1602_v12 = vadd.f32 %v1601_v9, %v1588_v11 }
 0x157   :  { %2317 = vmatpush.bf16.msra.mxu1 %v3712_v35 }
 0x15a   :  { %v1615_v2 = vpop.f32.mrf.mxu2 }
 0x15b   :  { %v1616_v14 = vadd.f32 %v1615_v2, %v1602_v12  ;;  %2318 = vmatpush.bf16.msra.mxu1 %v3711_v54 }
 0x15d   :  { %v1630_v17 = vadd.f32 %v1629_v15, %v1616_v14 }
 0x15f   :  { %2319 = vmatpush.bf16.msra.mxu1 %v3710_v40 }
 0x162   :  { %v1641_v43 = vpop.f32.mrf.mxu2 }
 0x163   :  { %v1642_v18 = vadd.f32 %v1641_v43, %v1628_v16 }
 0x165   :  { %v1649_v20 = vmax.f32 %v1642_v18, 0.0  ;;  %v3721_v18 = vld [vmem:[%s4348_s6] ss:$0 sm:$0xff] }
 0x16a   :  { %v1643_v19 = vpop.f32.mrf.mxu2 }
 0x16b   :  { %v1644_v55 = vadd.f32 %v1643_v19, %v1630_v17 }
 0x16d   :  { %v1653_v21 = vmax.f32 %v1644_v55, 0.0  ;;  %v2057_v36 = vpop.f32.mrf.mxu3 }
 0x16e   :  { %v2058_v47 = vadd.f32 %v2057_v36, %v1724_v41 }
 0x16f   :  { %v1657_v22 = vpack.c.bf16 %v1653_v21, %v1649_v20 }
 0x171   :  { %2098 = vmatmul.bf16.vlgmr.msra.gmra.mxu0 %v1657_v22 }
 0x175   :  { %v2059_v44 = vpop.f32.mrf.mxu3 }
 0x176   :  { %v2060_v48 = vadd.f32 %v2059_v44, %v1724_v41 }
 0x181   :  { %2154 = vmatmul.bf16.vlgmr.msrb.gmra.mxu0 %v1657_v22  ;;  %v2071_v38 = vpop.f32.mrf.mxu1 }
 0x182   :  { %v2072_v49 = vadd.f32 %v2071_v38, %v2058_v47 }
 0x189   :  { %v2073_v45 = vpop.f32.mrf.mxu1 }
 0x18a   :  { %v2074_v37 = vadd.f32 %v2073_v45, %v2060_v48 }
 0x18d   :  { %v2113_v53 = vpop.f32.mrf.mxu3 }
 0x18e   :  { %v2114_v4 = vadd.f32 %v2113_v53, %v1725_v0 }
 0x191   :  { %v2127_v58 = vpop.f32.mrf.mxu1 }
 0x192   :  { %v2128_v42 = vadd.f32 %v2127_v58, %v2114_v4 }
 0x195   :  { %v2115_v2 = vpop.f32.mrf.mxu3 }
 0x196   :  { %v2116_v6 = vadd.f32 %v2115_v2, %v1725_v0 }
 0x199   :  { %v2129_v5 = vpop.f32.mrf.mxu1 }
 0x19a   :  { %v2130_v9 = vadd.f32 %v2129_v5, %v2116_v6 }
 0x1c1   :  { %v2085_v39 = vpop.f32.mrf.mxu2 }
 0x1c2   :  { %v2086_v52 = vadd.f32 %v2085_v39, %v2072_v49 }
 0x1c9   :  { %v2087_v60 = vpop.f32.mrf.mxu2 }
 0x1ca   :  { %v2088_v56 = vadd.f32 %v2087_v60, %v2074_v37 }
 0x1d1   :  { %v2141_v61 = vpop.f32.mrf.mxu2 }
 0x1d2   :  { %v2142_v10 = vadd.f32 %v2141_v61, %v2128_v42 }
 0x1d9   :  { %v2143_v7 = vpop.f32.mrf.mxu2 }
 0x1da   :  { %v2144_v11 = vadd.f32 %v2143_v7, %v2130_v9 }
 0x1ee   :  { %v2099_v46 = vpop.f32.mrf.mxu0 }
 0x1ef   :  { %v2100_v57 = vadd.f32 %v2099_v46, %v2086_v52 }
 0x1f1   :  { %v2160_v62 = vmax.f32 %v2100_v57, 0.0 }
 0x1f6   :  { %v2101_v59 = vpop.f32.mrf.mxu0 }
 0x1f7   :  { %v2102_v51 = vadd.f32 %v2101_v59, %v2088_v56 }
 0x1f9   :  { %v2162_v63 = vmax.f32 %v2102_v51, 0.0 }
 0x1fb   :  { %v2164_v1 = vpack.c.bf16 %v2162_v63, %v2160_v62 }
 0x1fd   :  { %2306 = vmatmul.bf16.vlgmr.msra.gmra.mxu3 %v2164_v1 }
 0x1fe   :  { %v2155_v3 = vpop.f32.mrf.mxu0 }
 0x1ff   :  { %v2156_v12 = vadd.f32 %v2155_v3, %v2142_v10 }
 0x201   :  { %v2161_v14 = vmax.f32 %v2156_v12, 0.0 }
 0x206   :  { %v2157_v43 = vpop.f32.mrf.mxu0 }
 0x207   :  { %v2158_v13 = vadd.f32 %v2157_v43, %v2144_v11 }
 0x209   :  { %v2163_v15 = vmax.f32 %v2158_v13, 0.0 }
 0x20b   :  { %v2165_v16 = vpack.c.bf16 %v2163_v15, %v2161_v14 }
 0x20d   :  { %2320 = vmatmul.bf16.vlgmr.msra.gmra.mxu1 %v2165_v16 }
 0x280   :  { %v2307_v17 = vpop.f32.mrf.mxu3 }
 0x281   :  { %v2308_v19 = vadd.f32 %v3721_v18, %v2307_v17 }
 0x288   :  { %v2309_v21 = vpop.f32.mrf.mxu3 }
 0x289   :  { %v2310_v22 = vadd.f32 %v3721_v18, %v2309_v21 }
 0x28a   :  { %v2321_v55 = vpop.f32.mrf.mxu1 }
 0x28b   :  { %v2322_v20 = vadd.f32 %v2321_v55, %v2308_v19 }
 0x28d   :  { %2327 = vst.msk [vmem:[%s4349_s7] sm:$0xff] %vm2326_vm1, %v2322_v20 }
 0x292   :  { %v2323_v23 = vpop.f32.mrf.mxu1 }
 0x293   :  { %v2324_v24 = vadd.f32 %v2323_v23, %v2310_v22 }
 0x295   :  { %2328 = vst.msk [vmem:[%s4349_s7 + $0x8] sm:$0xff] %vm2326_vm1, %v2324_v24 }
 0x296   :  { %2333 = vsyncpa [#allocation3], 1 }

</bundles_post_ra>
